<compile_context>
chip_gen: v7x
topology: tpu7x:2x2x1
jax: 0.10.0
libtpu: 0.0.40
codegen_flags: <defaults>
</compile_context>

<pallas_src>
import math
import functools

import jax
import jax.numpy as jnp
from jax import lax
from jax.experimental import pallas as pl
from jax.experimental.pallas import tpu as pltpu


def _round_up(x, m):
    return ((x + m - 1) // m) * m


def _vmem_capacity_bytes():
    try:
        return int(pltpu.get_tpu_info().vmem_capacity_bytes)
    except Exception:
        return 64 << 20                      # conservative fallback (v7x-sized)


def _make_modconv_kernel(Bsub, TR, Wt, C, OCp, KH, KW):
    """Kernel for one (batch-tile, row-tile) grid step.

    x_ref: (Bsub, TR + 2*pad, Wt + 2*pad, C)  style-modulated halo tile
    w_ref: (KH*KW, C, OCp)                    shared unscaled weight (resident)
    c_ref: (Bsub, 1, OCp)                     coef = scale * demod  (f32)
    o_ref: (Bsub, TR*Wt, OCp)                 lane-dense output tile
    """
    M = TR * Wt

    def kernel(x_ref, w_ref, c_ref, o_ref):
        xt = x_ref[...]
        acc = None
        for kh in range(KH):                 # static unroll: KH*KW MXU matmuls
            for kw in range(KW):
                patch = lax.slice(xt, (0, kh, kw, 0),
                                  (Bsub, kh + TR, kw + Wt, C))
                patch = patch.reshape(Bsub * M, C)
                d = jnp.dot(patch, w_ref[kh * KW + kw],
                            preferred_element_type=jnp.float32)
                acc = d if acc is None else acc + d
        out = acc.reshape(Bsub, M, OCp) * c_ref[...]   # scale+demod on the f32 acc
        o_ref[...] = out.astype(o_ref.dtype)

    return kernel


def modulated_conv2d(x, weight, mod_weight, mod_bias, style, *,
                     demodulate=True, eps=1e-8,
                     compute_dtype=jnp.bfloat16, out_dtype=None,
                     channels_last=False, row_tile=None, batch_tile=None):
    """ModulatedConv2d.forward (fused=True, upsample=False, downsample=False).

    x:          (N, C, H, W)  [or (N, H, W, C) if channels_last]
    weight:     (1, OC, C, KH, KW)   module's self.weight (unscaled)
    mod_weight: (C, style_dim)       EqualLinear weight of self.modulation
    mod_bias:   (C,)                 EqualLinear bias (bias_init=1)
    style:      (N, style_dim)
    returns     (N, OC, H, W)  [or (N, H, W, OC)] in out_dtype (default compute_dtype)
    """
    if out_dtype is None:
        out_dtype = compute_dtype
    if channels_last:
        N, H, W, C = x.shape
    else:
        N, C, H, W = x.shape
    _, OC, C_w, KH, KW = weight.shape
    assert C_w == C
    style_dim = mod_weight.shape[1]

    scale = 1.0 / math.sqrt(C * KH * KW)      # equalized-lr conv scale
    pad = KH // 2                             # self.padding = kernel_size // 2
    OCp = _round_up(OC, 128)                  # lane-dense output channels
    # TODO(synk): transposed (spatial-in-lanes) layout for OC << 128 layers
    # (to_rgb etc.) to avoid the OC->128 writeback inflation.

    bpe = jnp.dtype(compute_dtype).itemsize
    obpe = jnp.dtype(out_dtype).itemsize
    sub_c = 16 if bpe == 2 else 8             # sublane tile of compute dtype
    sub_o = 16 if obpe == 2 else 8

    # Pad the compute width so the in-kernel (TR, Wt) -> rows collapse is
    # sublane-aligned; extra columns are zero-fed and sliced off afterwards.
    Wt = _round_up(W, sub_c)
    Wpt = Wt + 2 * pad

    # ---- generation-aware VMEM budget ---------------------------------------
    vmem_cap = _vmem_capacity_bytes()
    budget = max(24 << 20, min(int(vmem_cap * 0.75), vmem_cap - (12 << 20)))

    def tile_vmem_bytes(bs, tr):
        trh = tr + 2 * pad
        in_t = bs * trh * _round_up(Wpt, sub_c) * _round_up(C, 128) * bpe
        out_t = bs * _round_up(tr * Wt, sub_o) * OCp * obpe
        w_t = KH * KW * _round_up(C, sub_c) * OCp * bpe
        acc_t = bs * tr * Wt * OCp * 4 + in_t      # f32 acc + patch temporaries
        coef_t = bs * OCp * 4
        # inputs / outputs / weight are double-buffered by the BlockSpec pipeline.
        # TODO(synk): pipeline_mode=pl.Buffered(1) on the resident weight/coef
        # would reclaim one weight buffer on v7x once validated on-device.
        return 2 * in_t + 2 * out_t + 2 * w_t + 2 * coef_t + acc_t + (2 << 20)

    # ---- row-tile / batch-tile selection -------------------------------------
    if row_tile is not None:
        TR = max(1, min(int(row_tile), H))
        nrt = -(-H // TR)
    else:
        TR, nrt = H, 1
        while nrt < H and tile_vmem_bytes(1, TR) > budget:
            nrt *= 2
            TR = -(-H // nrt)
    Hpad = nrt * TR

    if batch_tile is not None:
        Bsub = max(1, min(int(batch_tile), N))
    elif nrt == 1:
        # Fold small images into one step (amortize ~0.35us/step) while keeping
        # >= 2 grid steps so the "parallel" axes stay useful for the megacore.
        Bsub = 1
        while (Bsub * 2 <= N
               and Bsub * 2 * TR * Wt <= 4096
               and tile_vmem_bytes(Bsub * 2, TR) <= budget
               and -(-N // (Bsub * 2)) * nrt >= 2):
            Bsub *= 2
    else:
        Bsub = 1
    Np = _round_up(N, Bsub)

    # ---- EqualLinear modulation (tiny -> plain JAX) ---------------------------
    mod_scale = 1.0 / math.sqrt(style_dim)    # w = 1, lr_mul = 1
    s = (style.astype(jnp.float32) @ (mod_weight.astype(jnp.float32) * mod_scale).T
         + mod_bias.astype(jnp.float32))      # (N, C)

    w0 = weight[0].astype(jnp.float32)        # (OC, C, KH, KW)

    # ---- per-(batch, oc) coefficient: equalized-lr scale (+ demodulation) -----
    if demodulate:
        wsq = jnp.sum(w0 ** 2, axis=(2, 3))                       # (OC, C)
        sig2 = (scale * scale) * (s ** 2) @ wsq.T + eps           # (N, OC)
        coef = scale * lax.rsqrt(sig2)
    else:
        coef = jnp.full((N, OC), scale, jnp.float32)
    coef = jnp.pad(coef, ((0, Np - N), (0, OCp - OC))).reshape(Np, 1, OCp)

    # ---- style-modulated activation: NHWC, compute dtype, halo'd row chunks ---
    if channels_last:
        xm = x.astype(jnp.float32) * s[:, None, None, :]
    else:
        xm = x.astype(jnp.float32) * s[:, :, None, None]
        xm = jnp.transpose(xm, (0, 2, 3, 1))                      # NHWC
        # TODO(synk): run the surrounding model NHWC (channels_last=True) to drop
        # this transpose and the one on the output.
    xm = xm.astype(compute_dtype)             # halves staged HBM bytes vs f32
    xp = jnp.pad(xm, ((0, 0),
                      (pad, pad + (Hpad - H)),
                      (pad, pad + (Wt - W)),
                      (0, 0)))
    TRh = TR + 2 * pad
    if nrt == 1:
        chunks = xp[:, None]                                      # (N,1,TRh,Wpt,C)
    else:
        chunks = jnp.stack([xp[:, r * TR: r * TR + TRh] for r in range(nrt)],
                           axis=1)                                # (N,nrt,TRh,Wpt,C)
    if Np != N:
        chunks = jnp.pad(chunks, ((0, Np - N),) + ((0, 0),) * 4)

    # ---- shared (unscaled, unmodulated) weight: (KH*KW, C, OCp) ----------------
    w2 = jnp.transpose(w0, (2, 3, 1, 0)).reshape(KH * KW, C, OC)
    if OCp != OC:
        w2 = jnp.pad(w2, ((0, 0), (0, 0), (0, OCp - OC)))
    w2 = w2.astype(compute_dtype)

    # ---- pallas call -----------------------------------------------------------
    kernel = _make_modconv_kernel(Bsub, TR, Wt, C, OCp, KH, KW)
    grid = (Np // Bsub, nrt)
    tile_bytes = tile_vmem_bytes(Bsub, TR)
    vmem_limit = int(max(16 << 20,
                         min(vmem_cap - (8 << 20),
                             max(32 << 20, tile_bytes + (8 << 20)))))

    cost = pl.CostEstimate(
        flops=2 * Np * Hpad * Wt * KH * KW * C * OCp,
        transcendentals=0,
        bytes_accessed=(chunks.size * bpe + w2.size * bpe + coef.size * 4
                        + Np * nrt * TR * Wt * OCp * obpe),
    )

    out = pl.pallas_call(
        kernel,
        out_shape=jax.ShapeDtypeStruct((Np, nrt, TR * Wt, OCp), out_dtype),
        grid_spec=pltpu.PrefetchScalarGridSpec(
            num_scalar_prefetch=0,
            grid=grid,
            in_specs=[
                pl.BlockSpec((Bsub, None, TRh, Wpt, C),
                             lambda b, r: (b, r, 0, 0, 0)),        # halo row tile
                pl.BlockSpec((KH * KW, C, OCp),
                             lambda b, r: (0, 0, 0)),              # resident weight
                pl.BlockSpec((Bsub, 1, OCp),
                             lambda b, r: (b, 0, 0)),              # per-sample coef
            ],
            out_specs=pl.BlockSpec((Bsub, None, TR * Wt, OCp),
                                   lambda b, r: (b, r, 0, 0)),
        ),
        compiler_params=pltpu.CompilerParams(
            dimension_semantics=("parallel", "parallel"),
            vmem_limit_bytes=vmem_limit,
            allow_input_fusion=[0],   # let XLA fuse the modulate/pad/stage producer
        ),
        cost_estimate=cost,
    )(chunks, w2, coef)

    out = out.reshape(Np, Hpad, Wt, OCp)[:N, :H, :W, :OC]
    if channels_last:
        return out
    return jnp.transpose(out, (0, 3, 1, 2))                        # back to NCHW
    # TODO(synk): upsample/downsample branches (conv_transpose2d + Blur/upfirdn2d)
    # and the fused=False grouped path are not implemented; only the default
    # stride-1, padding=kernel_size//2 fused path is.


if __name__ == "__main__":
    key = jax.random.PRNGKey(0)
    k1, k2, k3, k4 = jax.random.split(key, 4)

    # ModulatedConv2d(in_channel=4, out_channel=8, kernel_size=3, style_dim=16,
    #                 demodulate=True, fused=True)
    N, C, H, W = 2, 4, 16, 16
    OC, ks, style_dim = 8, 3, 16
    pad = ks // 2
    scale = 1.0 / math.sqrt(C * ks * ks)

    x = jax.random.normal(k1, (N, C, H, W), jnp.float32)
    style = jax.random.normal(k2, (N, style_dim), jnp.float32)
    weight = jax.random.normal(k3, (1, OC, C, ks, ks), jnp.float32)      # torch.randn
    mod_weight = jax.random.normal(k4, (C, style_dim), jnp.float32)      # EqualLinear
    mod_bias = jnp.ones((C,), jnp.float32)                               # bias_init=1

    # ---- exact f32 reference: mirrors the PyTorch fused path (per-sample W) ----
    s_ref = style @ (mod_weight * (1.0 / math.sqrt(style_dim))).T + mod_bias   # (N, C)
    w_mod = scale * weight * s_ref[:, None, :, None, None]                     # (N,OC,C,k,k)
    demod = lax.rsqrt(jnp.sum(w_mod ** 2, axis=(2, 3, 4)) + 1e-8)              # (N, OC)
    w_mod = w_mod * demod[:, :, None, None, None]
    ref = jnp.concatenate([
        lax.conv_general_dilated(x[b:b + 1], w_mod[b], (1, 1),
                                 [(pad, pad), (pad, pad)],
                                 dimension_numbers=("NCHW", "OIHW", "NCHW"))
        for b in range(N)], axis=0)

    # ---- f32 compute / f32 output: tight check ---------------------------------
    fwd_f32 = jax.jit(functools.partial(modulated_conv2d,
                                        compute_dtype=jnp.float32,
                                        out_dtype=jnp.float32))
    out32 = jax.block_until_ready(fwd_f32(x, weight, mod_weight, mod_bias, style))
    assert out32.shape == (N, OC, H, W) and out32.dtype == jnp.float32
    assert jnp.allclose(out32, ref, rtol=1e-4, atol=1e-4)

    # ---- f32, forced row tiling (halo path) + batch folding: tight check -------
    fwd_tiled = jax.jit(functools.partial(modulated_conv2d,
                                          compute_dtype=jnp.float32,
                                          out_dtype=jnp.float32,
                                          row_tile=8, batch_tile=2))
    out_t = jax.block_until_ready(fwd_tiled(x, weight, mod_weight, mod_bias, style))
    assert out_t.shape == (N, OC, H, W)
    assert jnp.allclose(out_t, ref, rtol=1e-4, atol=1e-4)

    # ---- default path (bf16 operands + bf16 output): bf16-matched reference ----
    fwd_bf = jax.jit(modulated_conv2d)
    out_bf = jax.block_until_ready(fwd_bf(x, weight, mod_weight, mod_bias, style))
    assert out_bf.shape == (N, OC, H, W) and out_bf.dtype == jnp.bfloat16
    xm_bf = (x * s_ref[:, :, None, None]).astype(jnp.bfloat16)
    wsq = jnp.sum(weight[0] ** 2, axis=(2, 3))                                 # (OC, C)
    coef_ref = scale * lax.rsqrt((scale * scale) * (s_ref ** 2) @ wsq.T + 1e-8)
    conv_bf = lax.conv_general_dilated(
        xm_bf, weight[0].astype(jnp.bfloat16), (1, 1), [(pad, pad), (pad, pad)],
        dimension_numbers=("NCHW", "OIHW", "NCHW"),
        preferred_element_type=jnp.float32)
    ref_bf = conv_bf * coef_ref[:, :, None, None]
    assert jnp.allclose(out_bf.astype(jnp.float32), ref_bf, rtol=2e-2, atol=2e-2)

    print("KERNEL_OK")
</pallas_src>

<mosaic_0001>
module attributes {stable_mosaic.version = 11 : i64} {
  func.func @kernel(%arg0: i32, %arg1: i32, %arg2: memref<1x1x18x18x4xf32, #tpu.memory_space<vmem>>, %arg3: memref<9x4x128xf32, #tpu.memory_space<vmem>>, %arg4: memref<1x1x128xf32, #tpu.memory_space<vmem>>, %arg5: memref<1x1x256x128xf32, #tpu.memory_space<vmem>>) attributes {dimension_semantics = [#tpu.dimension_semantics<parallel>, #tpu.dimension_semantics<parallel>], iteration_bounds = array<i64: 2, 1>, scalar_prefetch = 0 : i64, scratch_operands = 0 : i64, tpu.core_type = #tpu.core_type<tc>, window_params = [{transform_indices = @transform_0, window_bounds = array<i64: 1, 1, 18, 18, 4>}, {pipeline_mode = #tpu.pipeline_mode<synchronous>, transform_indices = @transform_1, window_bounds = array<i64: 9, 4, 128>}, {transform_indices = @transform_2, window_bounds = array<i64: 1, 1, 128>}, {transform_indices = @transform_3, window_bounds = array<i64: 1, 1, 256, 128>}]} {
    %c0 = arith.constant 0 : index
    %c0_0 = arith.constant 0 : index
    %c0_1 = arith.constant 0 : index
    %c0_2 = arith.constant 0 : index
    %c0_3 = arith.constant 0 : index
    %0 = vector.load %arg2[%c0, %c0_0, %c0_1, %c0_2, %c0_3] : memref<1x1x18x18x4xf32, #tpu.memory_space<vmem>>, vector<1x1x18x18x4xf32>
    %1 = vector.shape_cast %0 : vector<1x1x18x18x4xf32> to vector<1x18x18x4xf32>
    %2 = vector.extract_strided_slice %1 {offsets = [0, 0, 0, 0], sizes = [1, 16, 16, 4], strides = [1, 1, 1, 1]} : vector<1x18x18x4xf32> to vector<1x16x16x4xf32>
    %3 = vector.shape_cast %2 : vector<1x16x16x4xf32> to vector<256x4xf32>
    %c0_4 = arith.constant 0 : index
    %c0_5 = arith.constant 0 : index
    %c0_6 = arith.constant 0 : index
    %4 = vector.load %arg3[%c0_4, %c0_5, %c0_6] : memref<9x4x128xf32, #tpu.memory_space<vmem>>, vector<1x4x128xf32>
    %5 = vector.shape_cast %4 : vector<1x4x128xf32> to vector<4x128xf32>
    %cst = arith.constant dense<0.000000e+00> : vector<256x128xf32>
    %6 = tpu.matmul %3, %5, %cst {dimension_numbers = #tpu.dot_dimension_numbers<[1], [0], [0], [1], [0, 0, 1, 1], [], []>} : vector<256x4xf32>, vector<4x128xf32>, vector<256x128xf32> -> vector<256x128xf32>
    %7 = vector.extract_strided_slice %1 {offsets = [0, 0, 1, 0], sizes = [1, 16, 16, 4], strides = [1, 1, 1, 1]} : vector<1x18x18x4xf32> to vector<1x16x16x4xf32>
    %8 = vector.shape_cast %7 : vector<1x16x16x4xf32> to vector<256x4xf32>
    %c1 = arith.constant 1 : index
    %c0_7 = arith.constant 0 : index
    %c0_8 = arith.constant 0 : index
    %9 = vector.load %arg3[%c1, %c0_7, %c0_8] : memref<9x4x128xf32, #tpu.memory_space<vmem>>, vector<1x4x128xf32>
    %10 = vector.shape_cast %9 : vector<1x4x128xf32> to vector<4x128xf32>
    %cst_9 = arith.constant dense<0.000000e+00> : vector<256x128xf32>
    %11 = tpu.matmul %8, %10, %cst_9 {dimension_numbers = #tpu.dot_dimension_numbers<[1], [0], [0], [1], [0, 0, 1, 1], [], []>} : vector<256x4xf32>, vector<4x128xf32>, vector<256x128xf32> -> vector<256x128xf32>
    %12 = arith.addf %6, %11 : vector<256x128xf32>
    %13 = vector.extract_strided_slice %1 {offsets = [0, 0, 2, 0], sizes = [1, 16, 16, 4], strides = [1, 1, 1, 1]} : vector<1x18x18x4xf32> to vector<1x16x16x4xf32>
    %14 = vector.shape_cast %13 : vector<1x16x16x4xf32> to vector<256x4xf32>
    %c2 = arith.constant 2 : index
    %c0_10 = arith.constant 0 : index
    %c0_11 = arith.constant 0 : index
    %15 = vector.load %arg3[%c2, %c0_10, %c0_11] : memref<9x4x128xf32, #tpu.memory_space<vmem>>, vector<1x4x128xf32>
    %16 = vector.shape_cast %15 : vector<1x4x128xf32> to vector<4x128xf32>
    %cst_12 = arith.constant dense<0.000000e+00> : vector<256x128xf32>
    %17 = tpu.matmul %14, %16, %cst_12 {dimension_numbers = #tpu.dot_dimension_numbers<[1], [0], [0], [1], [0, 0, 1, 1], [], []>} : vector<256x4xf32>, vector<4x128xf32>, vector<256x128xf32> -> vector<256x128xf32>
    %18 = arith.addf %12, %17 : vector<256x128xf32>
    %19 = vector.extract_strided_slice %1 {offsets = [0, 1, 0, 0], sizes = [1, 16, 16, 4], strides = [1, 1, 1, 1]} : vector<1x18x18x4xf32> to vector<1x16x16x4xf32>
    %20 = vector.shape_cast %19 : vector<1x16x16x4xf32> to vector<256x4xf32>
    %c3 = arith.constant 3 : index
    %c0_13 = arith.constant 0 : index
    %c0_14 = arith.constant 0 : index
    %21 = vector.load %arg3[%c3, %c0_13, %c0_14] : memref<9x4x128xf32, #tpu.memory_space<vmem>>, vector<1x4x128xf32>
    %22 = vector.shape_cast %21 : vector<1x4x128xf32> to vector<4x128xf32>
    %cst_15 = arith.constant dense<0.000000e+00> : vector<256x128xf32>
    %23 = tpu.matmul %20, %22, %cst_15 {dimension_numbers = #tpu.dot_dimension_numbers<[1], [0], [0], [1], [0, 0, 1, 1], [], []>} : vector<256x4xf32>, vector<4x128xf32>, vector<256x128xf32> -> vector<256x128xf32>
    %24 = arith.addf %18, %23 : vector<256x128xf32>
    %25 = vector.extract_strided_slice %1 {offsets = [0, 1, 1, 0], sizes = [1, 16, 16, 4], strides = [1, 1, 1, 1]} : vector<1x18x18x4xf32> to vector<1x16x16x4xf32>
    %26 = vector.shape_cast %25 : vector<1x16x16x4xf32> to vector<256x4xf32>
    %c4 = arith.constant 4 : index
    %c0_16 = arith.constant 0 : index
    %c0_17 = arith.constant 0 : index
    %27 = vector.load %arg3[%c4, %c0_16, %c0_17] : memref<9x4x128xf32, #tpu.memory_space<vmem>>, vector<1x4x128xf32>
    %28 = vector.shape_cast %27 : vector<1x4x128xf32> to vector<4x128xf32>
    %cst_18 = arith.constant dense<0.000000e+00> : vector<256x128xf32>
    %29 = tpu.matmul %26, %28, %cst_18 {dimension_numbers = #tpu.dot_dimension_numbers<[1], [0], [0], [1], [0, 0, 1, 1], [], []>} : vector<256x4xf32>, vector<4x128xf32>, vector<256x128xf32> -> vector<256x128xf32>
    %30 = arith.addf %24, %29 : vector<256x128xf32>
    %31 = vector.extract_strided_slice %1 {offsets = [0, 1, 2, 0], sizes = [1, 16, 16, 4], strides = [1, 1, 1, 1]} : vector<1x18x18x4xf32> to vector<1x16x16x4xf32>
    %32 = vector.shape_cast %31 : vector<1x16x16x4xf32> to vector<256x4xf32>
    %c5 = arith.constant 5 : index
    %c0_19 = arith.constant 0 : index
    %c0_20 = arith.constant 0 : index
    %33 = vector.load %arg3[%c5, %c0_19, %c0_20] : memref<9x4x128xf32, #tpu.memory_space<vmem>>, vector<1x4x128xf32>
    %34 = vector.shape_cast %33 : vector<1x4x128xf32> to vector<4x128xf32>
    %cst_21 = arith.constant dense<0.000000e+00> : vector<256x128xf32>
    %35 = tpu.matmul %32, %34, %cst_21 {dimension_numbers = #tpu.dot_dimension_numbers<[1], [0], [0], [1], [0, 0, 1, 1], [], []>} : vector<256x4xf32>, vector<4x128xf32>, vector<256x128xf32> -> vector<256x128xf32>
    %36 = arith.addf %30, %35 : vector<256x128xf32>
    %37 = vector.extract_strided_slice %1 {offsets = [0, 2, 0, 0], sizes = [1, 16, 16, 4], strides = [1, 1, 1, 1]} : vector<1x18x18x4xf32> to vector<1x16x16x4xf32>
    %38 = vector.shape_cast %37 : vector<1x16x16x4xf32> to vector<256x4xf32>
    %c6 = arith.constant 6 : index
    %c0_22 = arith.constant 0 : index
    %c0_23 = arith.constant 0 : index
    %39 = vector.load %arg3[%c6, %c0_22, %c0_23] : memref<9x4x128xf32, #tpu.memory_space<vmem>>, vector<1x4x128xf32>
    %40 = vector.shape_cast %39 : vector<1x4x128xf32> to vector<4x128xf32>
    %cst_24 = arith.constant dense<0.000000e+00> : vector<256x128xf32>
    %41 = tpu.matmul %38, %40, %cst_24 {dimension_numbers = #tpu.dot_dimension_numbers<[1], [0], [0], [1], [0, 0, 1, 1], [], []>} : vector<256x4xf32>, vector<4x128xf32>, vector<256x128xf32> -> vector<256x128xf32>
    %42 = arith.addf %36, %41 : vector<256x128xf32>
    %43 = vector.extract_strided_slice %1 {offsets = [0, 2, 1, 0], sizes = [1, 16, 16, 4], strides = [1, 1, 1, 1]} : vector<1x18x18x4xf32> to vector<1x16x16x4xf32>
    %44 = vector.shape_cast %43 : vector<1x16x16x4xf32> to vector<256x4xf32>
    %c7 = arith.constant 7 : index
    %c0_25 = arith.constant 0 : index
    %c0_26 = arith.constant 0 : index
    %45 = vector.load %arg3[%c7, %c0_25, %c0_26] : memref<9x4x128xf32, #tpu.memory_space<vmem>>, vector<1x4x128xf32>
    %46 = vector.shape_cast %45 : vector<1x4x128xf32> to vector<4x128xf32>
    %cst_27 = arith.constant dense<0.000000e+00> : vector<256x128xf32>
    %47 = tpu.matmul %44, %46, %cst_27 {dimension_numbers = #tpu.dot_dimension_numbers<[1], [0], [0], [1], [0, 0, 1, 1], [], []>} : vector<256x4xf32>, vector<4x128xf32>, vector<256x128xf32> -> vector<256x128xf32>
    %48 = arith.addf %42, %47 : vector<256x128xf32>
    %49 = vector.extract_strided_slice %1 {offsets = [0, 2, 2, 0], sizes = [1, 16, 16, 4], strides = [1, 1, 1, 1]} : vector<1x18x18x4xf32> to vector<1x16x16x4xf32>
    %50 = vector.shape_cast %49 : vector<1x16x16x4xf32> to vector<256x4xf32>
    %c8 = arith.constant 8 : index
    %c0_28 = arith.constant 0 : index
    %c0_29 = arith.constant 0 : index
    %51 = vector.load %arg3[%c8, %c0_28, %c0_29] : memref<9x4x128xf32, #tpu.memory_space<vmem>>, vector<1x4x128xf32>
    %52 = vector.shape_cast %51 : vector<1x4x128xf32> to vector<4x128xf32>
    %cst_30 = arith.constant dense<0.000000e+00> : vector<256x128xf32>
    %53 = tpu.matmul %50, %52, %cst_30 {dimension_numbers = #tpu.dot_dimension_numbers<[1], [0], [0], [1], [0, 0, 1, 1], [], []>} : vector<256x4xf32>, vector<4x128xf32>, vector<256x128xf32> -> vector<256x128xf32>
    %54 = arith.addf %48, %53 : vector<256x128xf32>
    %55 = vector.shape_cast %54 : vector<256x128xf32> to vector<1x256x128xf32>
    %c0_31 = arith.constant 0 : index
    %c0_32 = arith.constant 0 : index
    %c0_33 = arith.constant 0 : index
    %56 = vector.load %arg4[%c0_31, %c0_32, %c0_33] : memref<1x1x128xf32, #tpu.memory_space<vmem>>, vector<1x1x128xf32>
    %57 = vector.broadcast %56 : vector<1x1x128xf32> to vector<1x256x128xf32>
    %58 = arith.mulf %55, %57 : vector<1x256x128xf32>
    %c0_34 = arith.constant 0 : index
    %c0_35 = arith.constant 0 : index
    %c0_36 = arith.constant 0 : index
    %c0_37 = arith.constant 0 : index
    %59 = vector.load %arg5[%c0_34, %c0_35, %c0_36, %c0_37] : memref<1x1x256x128xf32, #tpu.memory_space<vmem>>, vector<1x1x256x128xf32>
    %60 = vector.shape_cast %59 : vector<1x1x256x128xf32> to vector<1x256x128xf32>
    %61 = vector.shape_cast %58 : vector<1x256x128xf32> to vector<1x1x256x128xf32>
    tpu.vector_store %arg5[%c0_34, %c0_35, %c0_36, %c0_37], %61 {strides = array<i32>} : memref<1x1x256x128xf32, #tpu.memory_space<vmem>>, vector<1x1x256x128xf32>,
    return
  }
  func.func @transform_0(%arg0: i32, %arg1: i32) -> (i32, i32, i32, i32, i32) {
    %c0_i32 = arith.constant 0 : i32
    %c0_i32_0 = arith.constant 0 : i32
    %c0_i32_1 = arith.constant 0 : i32
    %c0_i32_2 = arith.constant 0 : i32
    return %arg0, %arg1, %c0_i32, %c0_i32_0, %c0_i32_1 : i32, i32, i32, i32, i32
  }
  func.func @transform_1(%arg0: i32, %arg1: i32) -> (i32, i32, i32) {
    %c0_i32 = arith.constant 0 : i32
    %c0_i32_0 = arith.constant 0 : i32
    %c0_i32_1 = arith.constant 0 : i32
    %c0_i32_2 = arith.constant 0 : i32
    return %c0_i32, %c0_i32_0, %c0_i32_1 : i32, i32, i32
  }
  func.func @transform_2(%arg0: i32, %arg1: i32) -> (i32, i32, i32) {
    %c0_i32 = arith.constant 0 : i32
    %c0_i32_0 = arith.constant 0 : i32
    %c0_i32_1 = arith.constant 0 : i32
    return %arg0, %c0_i32, %c0_i32_0 : i32, i32, i32
  }
  func.func @transform_3(%arg0: i32, %arg1: i32) -> (i32, i32, i32, i32) {
    %c0_i32 = arith.constant 0 : i32
    %c0_i32_0 = arith.constant 0 : i32
    %c0_i32_1 = arith.constant 0 : i32
    return %arg0, %arg1, %c0_i32, %c0_i32_0 : i32, i32, i32, i32
  }
}

</mosaic_0001>

<bundles_post_ra>
// kernel: modulated_conv2d.1
= control target key start
LH: loop header
LB: loop body
LE: loop exit
PB: predicated region body
PF: predicated region fallthrough
CT: control target
= control target key end

     0   :  { %s4585_s12 = smov 0   ;;  %s4587_s13 = smov 0   ;;  %s5802_s0 = inlined_call_operand.vmem [shape: f32[2,1,18,18,4], index: 0, kind: input, shape index: {}]   ;;  %s5803_s1 = inlined_call_operand.vmem [shape: f32[9,4,128], index: 1, kind: input, shape index: {}]   ;;  %s5804_s2 = inlined_call_operand.vmem [shape: f32[2,1,128], index: 2, kind: input, shape index: {}]   ;;  %s5805_s3 = inlined_call_operand.vmem [shape: f32[2,1,256,128], index: 3, kind: output, shape index: {}]  }
   0x1   :  { %s4589_s14 = smov 0  }
   0x2 LB: > { %s25_s15 = sadd.s32 1, %s4559_s13  ;;  %p3198_p0 = scmp.ge.s32.totalorder %s4563_s14, 1  ;;  %s4563_s14 = sphi %s4589_s14, %s13_s14   ;;  %s4559_s13 = sphi %s4587_s13, %s5981_s13   ;;  %s4555_s12 = sphi %s4585_s12, %s5980_s12  }
   0x3   : > { %p27_p1 = scmp.ge.s32.totalorder %s25_s15, 2  ;;  %p165_p2 = scmp.lt.s32.totalorder %s4563_s14, 3 }
   0x5   : > { %s5983_s15 = smov (%p27_p1, %s25_s15), 0  ;;  %p166_p3 = pnand %p3198_p0, %p165_p2 }
   0x7   : > { %169 = sbr.rel (%p166_p3) target bundleno = 528 (0x210), region = 32 }
   0xe   : > { %v3202_v0 = vld [vmem:[%s5803_s1 + $0x4] sm:$0xf]  ;;  %vm472_vm0 = vcmask 1043456   ;;  %v4609_v1 = vld [vmem:[%s5803_s1 + $0x10] sm:$0xf]  ;;  %p200_p4 = scmp.lt.s32.totalorder %s4555_s12, 1 }
   0xf   : > { %3808 = vmatprep.subr.msk.mxu1 %vm472_vm0, %v3202_v0  ;;  %4008 = vmatprep.subr.msk.mxu0 %vm472_vm0, %v4609_v1  ;;  %v275_v2 = vld [vmem:[%s5803_s1] sm:$0xf]  ;;  %v3371_v3 = vld [vmem:[%s5803_s1 + $0x14] sm:$0xf]  ;;  %vm324_vm1 = vcmask 1046528   ;;  %vm407_vm2 = vcmask 31744  }
  0x10   : > { %3809 = vmatpush3.msk.msra.mxu1 %vm472_vm0, %v3202_v0  ;;  %4009 = vmatpush3.msk.msra.mxu0 %vm472_vm0, %v4609_v1  ;;  %s5985_s12 = smov (!%p200_p4, %s4555_s12), 1  ;;  %v4696_v33 = vld [vmem:[%s5803_s1 + $0x18] sm:$0xf]  ;;  %v4706_v35 = vld [vmem:[%s5803_s1 + $0x8] sm:$0xf]  ;;  %vm993_vm3 = vcmask 1045504  }
  0x11   : > { %3858 = vmatprep.subr.msk.mxu1 %vm472_vm0, %v275_v2  ;;  %4058 = vmatprep.subr.msk.mxu0 %vm472_vm0, %v3371_v3  ;;  %s4516_s24 = smul.u32 432, %s5985_s12  ;;  %s211_s17 = scalar_lea.vmem %s5804_s2, %s5985_s12 }
  0x12   : > { %s3510_s18 = sshll.u32 %s5985_s12, 8 }
  0x13   : > { %s4631_s27 = scalar_lea.vmem %s5802_s0, %s4516_s24  ;;  %s5726_s21 = scalar_lea.vmem %s5805_s3, %s3510_s18 }
  0x14   : > { %v4634_v4 = vld [vmem:[%s4631_s27] sm:$0xff]  ;;  %v4637_v5 = vld [vmem:[%s4631_s27 + $0x8] sm:$0xff]  ;;  %v4640_v6 = vld [vmem:[%s4631_s27 + $0x18] sm:$0xff] }
  0x15   : > { %5879 = vst [vmem:[#allocation2_spill] sm:$0xff] %v4640_v6  ;;  %v325_v7 = vrot.slane %v4634_v4, 1  ;;  %v326_v8 = vrot.slane %v4637_v5, 1  ;;  %v4645_v9 = vld [vmem:[%s4631_s27 + $0x20] sm:$0xff]  ;;  %v330_v10 = vrot.slane %v4640_v6, 1  ;;  %v4657_v15 = vld [vmem:[%s4631_s27 + $0x30] sm:$0xff] }
  0x16   : > { %5880 = vst [vmem:[#allocation3_spill] sm:$0xff] %v4645_v9  ;;  %v4649_v11 = vld [vmem:[%s4631_s27 + $0x10] sm:$0x3]  ;;  %v331_v12 = vrot.slane %v4645_v9, 1  ;;  %v4654_v14 = vld [vmem:[%s4631_s27 + $0x28] sm:$0x3] }
  0x17   : > { %v328_v13 = vrot.slane %v4649_v11, 1  ;;  %v327_v16 = vsel %vm324_vm1, %v325_v7, %v326_v8  ;;  %v333_v17 = vrot.slane %v4654_v14, 1  ;;  %v4662_v18 = vld [vmem:[%s4631_s27 + $0x38] sm:$0xff]  ;;  %v335_v19 = vrot.slane %v4657_v15, 1  ;;  %v4666_v20 = vld [vmem:[%s4631_s27 + $0x40] sm:$0x3] }
  0x18   : > { %3810 = vmatprep.mubr.msk.f32.mxu1 %vm407_vm2, %v327_v16  ;;  %v332_v21 = vsel %vm324_vm1, %v330_v10, %v331_v12  ;;  %v336_v23 = vrot.slane %v4662_v18, 1  ;;  %v338_v24 = vrot.slane %v4666_v20, 1  ;;  %v4674_v25 = vld [vmem:[%s4631_s27 + $0x48] sm:$0xff]  ;;  %v4677_v26 = vld [vmem:[%s4631_s27 + $0x50] sm:$0xff]  ;;  %v4680_v27 = vld [vmem:[%s4631_s27 + $0x58] sm:$0x3] }
  0x19   : > { %v329_v22 = vsel %vm324_vm1, %v326_v8, %v328_v13  ;;  %4010 = vmatprep.mubr.msk.f32.mxu0 %vm407_vm2, %v332_v21  ;;  %v334_v28 = vsel %vm324_vm1, %v331_v12, %v333_v17  ;;  %v340_v29 = vrot.slane %v4674_v25, 1  ;;  %v341_v30 = vrot.slane %v4677_v26, 1  ;;  %v4688_v31 = vld [vmem:[%s4631_s27 + $0x60] sm:$0xff]  ;;  %v4691_v32 = vld [vmem:[%s4631_s27 + $0x68] sm:$0xff]  ;;  %v4722_v41 = vld [vmem:[%s4631_s27 + $0x70] sm:$0x3] }
  0x1a   : > { %3811 = vmatmul.mubr.msk.f32.vlgmr.msra.gmra.mrb[0].mxu1 %vm407_vm2, %v329_v22  ;;  %4011 = vmatmul.mubr.msk.f32.vlgmr.msra.gmra.mrb[0].mxu0 %vm407_vm2, %v334_v28  ;;  %v4701_v34 = vsel %vm324_vm1, %v335_v19, %v336_v23  ;;  %v4711_v36 = vsel %vm324_vm1, %v336_v23, %v338_v24  ;;  %v343_v37 = vrot.slane %v4680_v27, 1  ;;  %v345_v39 = vrot.slane %v4688_v31, 1  ;;  %v4728_v42 = vld [vmem:[%s4631_s27 + $0x78] sm:$0xff]  ;;  %v4731_v43 = vld [vmem:[%s4631_s27 + $0x80] sm:$0xff]  ;;  %v4751_v49 = vld [vmem:[%s4631_s27 + $0x88] sm:$0x3] }
  0x1b   : > { %3859 = vmatpush3.msk.msra.mxu1 %vm472_vm0, %v275_v2  ;;  %5881 = vst [vmem:[#allocation4_spill] sm:$0xff] %v4701_v34  ;;  %4059 = vmatpush3.msk.msra.mxu0 %vm472_vm0, %v3371_v3  ;;  %5882 = vst [vmem:[#allocation5_spill] sm:$0xff] %v4711_v36  ;;  %v4717_v38 = vsel %vm324_vm1, %v340_v29, %v341_v30  ;;  %v346_v40 = vrot.slane %v4691_v32, 1  ;;  %v348_v45 = vrot.slane %v4722_v41, 1  ;;  %v350_v47 = vrot.slane %v4728_v42, 1  ;;  %v4756_v50 = vld [vmem:[%s4631_s27 + $0x90] sm:$0xff] }
  0x1c   : > { %3813 = vmatprep.mubr.msk.f32.mxu1 %vm407_vm2, %v332_v21  ;;  %4013 = vmatprep.mubr.msk.f32.mxu0 %vm407_vm2, %v4701_v34  ;;  %5883 = vst [vmem:[#allocation6_spill] sm:$0xff] %v4717_v38  ;;  %v4742_v44 = vsel %vm324_vm1, %v341_v30, %v343_v37  ;;  %v351_v48 = vrot.slane %v4731_v43, 1  ;;  %v4759_v51 = vld [vmem:[%s4631_s27 + $0x98] sm:$0xff]  ;;  %v353_v53 = vrot.slane %v4751_v49, 1  ;;  %v355_v55 = vrot.slane %v4756_v50, 1  ;;  %v4782_v58 = vld [vmem:[%s4631_s27 + $0xa8] sm:$0xff] }
  0x1d   : > { %4108 = vmatprep.subr.msk.mxu0 %vm472_vm0, %v4696_v33  ;;  %3908 = vmatprep.subr.msk.mxu1 %vm472_vm0, %v4706_v35  ;;  %5884 = vst [vmem:[#allocation7_spill] sm:$0xff] %v4742_v44  ;;  %v4746_v46 = vsel %vm324_vm1, %v345_v39, %v346_v40  ;;  %v4768_v52 = vsel %vm324_vm1, %v346_v40, %v348_v45  ;;  %v356_v56 = vrot.slane %v4759_v51, 1  ;;  %v4777_v57 = vld [vmem:[%s4631_s27 + $0xa0] sm:$0x3]  ;;  %v4785_v59 = vld [vmem:[%s4631_s27 + $0xb0] sm:$0xff]  ;;  %v360_v63 = vrot.slane %v4782_v58, 1 }
  0x1e   : > { %3814 = vmatmul.mubr.msk.f32.gmra.mrb[2].mxu1 %vm407_vm2, %v334_v28  ;;  %4014 = vmatmul.mubr.msk.f32.gmra.mrb[2].mxu0 %vm407_vm2, %v4711_v36  ;;  %5885 = vst [vmem:[#allocation8_spill] sm:$0xff] %v4746_v46  ;;  %5886 = vst [vmem:[#allocation9_spill] sm:$0xff] %v4768_v52  ;;  %v4772_v54 = vsel %vm324_vm1, %v350_v47, %v351_v48  ;;  %v4794_v60 = vsel %vm324_vm1, %v351_v48, %v353_v53  ;;  %v358_v61 = vrot.slane %v4777_v57, 1  ;;  %v4803_v2 = vld [vmem:[%s4631_s27 + $0xb8] sm:$0x3]  ;;  %v4808_v3 = vld [vmem:[%s4631_s27 + $0xc0] sm:$0xff] }
  0x1f   : > { %3816 = vmatprep.mubr.msk.f32.mxu1 %vm407_vm2, %v4701_v34  ;;  %4016 = vmatprep.mubr.msk.f32.mxu0 %vm407_vm2, %v4717_v38  ;;  %5887 = vst [vmem:[#allocation10_spill] sm:$0xff] %v4772_v54  ;;  %5888 = vst [vmem:[#allocation11_spill] sm:$0xff] %v4794_v60  ;;  %v4798_v62 = vsel %vm324_vm1, %v355_v55, %v356_v56  ;;  %v361_v0 = vrot.slane %v4785_v59, 1  ;;  %v4811_v7 = vld [vmem:[%s4631_s27 + $0xc8] sm:$0xff]  ;;  %v363_v10 = vrot.slane %v4803_v2, 1  ;;  %v365_v13 = vrot.slane %v4808_v3, 1 }
  0x20   : > { %5889 = vst [vmem:[#allocation12_spill] sm:$0xff] %v4798_v62  ;;  %v4820_v8 = vsel %vm324_vm1, %v356_v56, %v358_v61  ;;  %v366_v16 = vrot.slane %v4811_v7, 1  ;;  %v4829_v17 = vld [vmem:[%s4631_s27 + $0xd0] sm:$0x3]  ;;  %v999_v23 = vrot.slane %v4640_v6, 2  ;;  %v1000_v24 = vrot.slane %v4645_v9, 2 }
  0x21   : > { %5890 = vst [vmem:[#allocation13_spill] sm:$0xff] %v4820_v8  ;;  %v4824_v12 = vsel %vm324_vm1, %v360_v63, %v361_v0  ;;  %v4840_v19 = vsel %vm324_vm1, %v361_v0, %v363_v10  ;;  %v368_v21 = vrot.slane %v4829_v17, 1  ;;  %v4849_v28 = vld [vmem:[%s4631_s27 + $0xd8] sm:$0xff]  ;;  %v4852_v29 = vld [vmem:[%s4631_s27 + $0xe0] sm:$0xff]  ;;  %v1002_v30 = vrot.slane %v4654_v14, 2  ;;  %v4877_v53 = vld [vmem:[%s4631_s27 + $0xf0] sm:$0xff] }
  0x22   : > { %3817 = vmatmul.mubr.msk.f32.gmra.mrb[4].mxu1 %vm407_vm2, %v4711_v36  ;;  %4017 = vmatmul.mubr.msk.f32.gmra.mrb[4].mxu0 %vm407_vm2, %v4742_v44  ;;  %5891 = vst [vmem:[#allocation14_spill] sm:$0xff] %v4824_v12  ;;  %5892 = vst [vmem:[#allocation15_spill] sm:$0xff] %v4840_v19  ;;  %v4844_v22 = vsel %vm324_vm1, %v365_v13, %v366_v16  ;;  %v370_v39 = vrot.slane %v4849_v28, 1  ;;  %v371_v40 = vrot.slane %v4852_v29, 1  ;;  %v4869_v45 = vld [vmem:[%s4631_s27 + $0xe8] sm:$0x3] }
  0x23   : > { %3819 = vmatprep.mubr.msk.f32.mxu1 %vm407_vm2, %v4717_v38  ;;  %4019 = vmatprep.mubr.msk.f32.mxu0 %vm407_vm2, %v4746_v46  ;;  %5893 = vst [vmem:[#allocation16_spill] sm:$0xff] %v4844_v22  ;;  %v4864_v37 = vsel %vm324_vm1, %v366_v16, %v368_v21  ;;  %v4872_v47 = vsel %vm993_vm3, %v999_v23, %v1000_v24  ;;  %v1004_v48 = vrot.slane %v4657_v15, 2  ;;  %v1005_v14 = vrot.slane %v4662_v18, 2  ;;  %v4880_v55 = vld [vmem:[%s4631_s27 + $0xf8] sm:$0xff]  ;;  %v4901_v16 = vld [vmem:[%s4631_s27 + $0x100] sm:$0x3] }
  0x24   : > { %5894 = vst [vmem:[#allocation17_spill] sm:$0xff] %v4864_v37  ;;  %v373_v56 = vrot.slane %v4869_v45, 1  ;;  %v1007_v61 = vrot.slane %v4666_v20, 2  ;;  %v4893_v63 = vsel %vm993_vm3, %v1000_v24, %v1002_v30  ;;  %v4896_v0 = vsel %vm324_vm1, %v370_v39, %v371_v40  ;;  %v4912_v24 = vld [vmem:[%s4631_s27 + $0x110] sm:$0xff]  ;;  %v4919_v30 = vld [vmem:[%s5803_s1 + $0x1c] sm:$0xf] }
  0x25   : > { %5895 = vst [vmem:[#allocation18_spill] sm:$0xff] %v4896_v0  ;;  %v375_v10 = vrot.slane %v4877_v53, 1  ;;  %v376_v13 = vrot.slane %v4880_v55, 1  ;;  %v4904_v21 = vsel %vm993_vm3, %v1004_v48, %v1005_v14  ;;  %v1009_v20 = vrot.slane %v4674_v25, 2  ;;  %v5015_v36 = vld [vmem:[%s4631_s27 + $0x148] sm:$0x3] }
  0x26   : > { %3820 = vmatmul.mubr.msk.f32.gmra.mrb[6].mxu1 %vm407_vm2, %v4742_v44  ;;  %4020 = vmatmul.mubr.msk.f32.gmra.mrb[6].mxu0 %vm407_vm2, %v4768_v52  ;;  %v1010_v23 = vrot.slane %v4677_v26, 2  ;;  %v4926_v39 = vsel %vm324_vm1, %v371_v40, %v373_v56  ;;  %v4929_v48 = vsel %vm993_vm3, %v1005_v14, %v1007_v61  ;;  %v381_v40 = vrot.slane %v4912_v24, 1  ;;  %v4943_v56 = vld [vmem:[%s4631_s27 + $0x118] sm:$0x3] }
  0x27   : > { %3822 = vmatprep.mubr.msk.f32.mxu1 %vm407_vm2, %v4746_v46  ;;  %4022 = vmatprep.mubr.msk.f32.mxu0 %vm407_vm2, %v4772_v54  ;;  %5896 = vst [vmem:[#allocation19_spill] sm:$0xff] %v4926_v39  ;;  %5897 = vst [vmem:[#allocation20_spill] sm:$0xff] %v4929_v48  ;;  %v1014_v61 = vrot.slane %v4688_v31, 2  ;;  %v4988_v46 = vld [vmem:[%s4631_s27 + $0x138] sm:$0xff]  ;;  %v1022_v44 = vrot.slane %v4751_v49, 2  ;;  %v1027_v34 = vrot.slane %v4777_v57, 2 }
  0x28   : > { %v4946_v14 = vsel %vm993_vm3, %v1009_v20, %v1010_v23  ;;  %v383_v20 = vrot.slane %v4943_v56, 1  ;;  %v390_v38 = vrot.slane %v4988_v46, 1  ;;  %v1029_v57 = vrot.slane %v4782_v58, 2 }
  0x29   : > { %5899 = vst [vmem:[#allocation22_spill] sm:$0xff] %v4946_v14 }
  0x2a   : > { %3823 = vmatmul.mubr.msk.f32.gmra.mrb[8].mxu1 %vm407_vm2, %v4768_v52  ;;  %4023 = vmatmul.mubr.msk.f32.gmra.mrb[8].mxu0 %vm407_vm2, %v4794_v60  ;;  %v4980_v52 = vld [vmem:[%s4631_s27 + $0x130] sm:$0x3] }
  0x2b   : > { %3825 = vmatprep.mubr.msk.f32.mxu1 %vm407_vm2, %v4772_v54  ;;  %4025 = vmatprep.mubr.msk.f32.mxu0 %vm407_vm2, %v4798_v62 }
  0x2e   : > { %3826 = vmatmul.mubr.msk.f32.gmra.mrb[10].mxu1 %vm407_vm2, %v4794_v60  ;;  %4026 = vmatmul.mubr.msk.f32.gmra.mrb[10].mxu0 %vm407_vm2, %v4820_v8 }
  0x2f   : > { %3828 = vmatprep.mubr.msk.f32.mxu1 %vm407_vm2, %v4798_v62  ;;  %4028 = vmatprep.mubr.msk.f32.mxu0 %vm407_vm2, %v4824_v12  ;;  %v1017_v62 = vrot.slane %v4722_v41, 2  ;;  %v1019_v41 = vrot.slane %v4728_v42, 2 }
  0x32   : > { %3829 = vmatmul.mubr.msk.f32.gmra.mrb[12].mxu1 %vm407_vm2, %v4820_v8  ;;  %4029 = vmatmul.mubr.msk.f32.gmra.mrb[12].mxu0 %vm407_vm2, %v4840_v19  ;;  %v4951_v8 = vld [vmem:[%s4631_s27 + $0x120] sm:$0xff] }
  0x33   : > { %3831 = vmatprep.mubr.msk.f32.mxu1 %vm407_vm2, %v4824_v12  ;;  %4031 = vmatprep.mubr.msk.f32.mxu0 %vm407_vm2, %v4844_v22  ;;  %v1012_v12 = vrot.slane %v4680_v27, 2  ;;  %v385_v54 = vrot.slane %v4951_v8, 1 }
  0x35   : > { %v4972_v60 = vsel %vm993_vm3, %v1010_v23, %v1012_v12  ;;  %v4991_v12 = vld [vmem:[%s4631_s27 + $0x140] sm:$0xff] }
  0x36   : > { %3832 = vmatmul.mubr.msk.f32.gmra.mrb[14].mxu1 %vm407_vm2, %v4840_v19  ;;  %4032 = vmatmul.mubr.msk.f32.gmra.mrb[14].mxu0 %vm407_vm2, %v4864_v37  ;;  %v4937_v19 = vsel %vm324_vm1, %v375_v10, %v376_v13  ;;  %v4954_v10 = vld [vmem:[%s4631_s27 + $0x128] sm:$0xff]  ;;  %5901 = vst [vmem:[#allocation24_spill] sm:$0xff] %v4972_v60 }
  0x37   : > { %3834 = vmatprep.mubr.msk.f32.mxu1 %vm407_vm2, %v4844_v22  ;;  %4060 = vmatprep.mubr.msk.f32.mxu0 %vm407_vm2, %v4872_v47  ;;  %v4909_v22 = vld [vmem:[%s4631_s27 + $0x108] sm:$0xff]  ;;  %5898 = vst [vmem:[#allocation21_spill] sm:$0xff] %v4937_v19 }
  0x3a   : > { %3835 = vmatmul.mubr.msk.f32.gmra.mrb[16].mxu1 %vm407_vm2, %v4864_v37  ;;  %4061 = vmatmul.mubr.msk.f32.vlgmr.msra.gmra.mrb[0].mxu0 %vm407_vm2, %v4893_v63  ;;  %v378_v37 = vrot.slane %v4901_v16, 1 }
  0x3b   : > { %3837 = vmatprep.mubr.msk.f32.mxu1 %vm407_vm2, %v4896_v0  ;;  %4109 = vmatpush3.msk.msra.mxu0 %vm472_vm0, %v4696_v33  ;;  %v380_v0 = vrot.slane %v4909_v22, 1  ;;  %v1015_v33 = vrot.slane %v4691_v32, 2 }
  0x3c   : > { %4063 = vmatprep.mubr.msk.f32.mxu0 %vm407_vm2, %v4904_v21  ;;  %4158 = vmatprep.subr.msk.mxu0 %vm472_vm0, %v4919_v30  ;;  %v4965_v27 = vsel %vm324_vm1, %v376_v13, %v378_v37  ;;  %v1020_v13 = vrot.slane %v4731_v43, 2 }
  0x3d   : > { %5900 = vst [vmem:[#allocation23_spill] sm:$0xff] %v4965_v27  ;;  %v4983_v37 = vsel %vm993_vm3, %v1014_v61, %v1015_v33  ;;  %v5003_v23 = vsel %vm993_vm3, %v1015_v33, %v1017_v62  ;;  %v388_v61 = vrot.slane %v4980_v52, 1  ;;  %v1024_v62 = vrot.slane %v4756_v50, 2 }
  0x3e   : > { %3838 = vmatmul.mubr.msk.f32.gmra.mrb[18].mxu1 %vm407_vm2, %v4926_v39  ;;  %4064 = vmatmul.mubr.msk.f32.gmra.mrb[2].mxu0 %vm407_vm2, %v4929_v48  ;;  %v4975_v39 = vsel %vm324_vm1, %v380_v0, %v381_v40  ;;  %5903 = vst [vmem:[#allocation26_spill] sm:$0xff] %v4983_v37  ;;  %v5000_v0 = vsel %vm324_vm1, %v381_v40, %v383_v20  ;;  %5905 = vst [vmem:[#allocation28_spill] sm:$0xff] %v5003_v23  ;;  %v1025_v33 = vrot.slane %v4759_v51, 2  ;;  %v5023_v20 = vld [vmem:[%s4631_s27 + $0x150] sm:$0xff]  ;;  %v5085_v48 = vld [vmem:[%s4631_s27 + $0x178] sm:$0x3] }
  0x3f   : > { %3840 = vmatprep.mubr.msk.f32.mxu1 %vm407_vm2, %v4937_v19  ;;  %4066 = vmatprep.mubr.msk.f32.mxu0 %vm407_vm2, %v4946_v14  ;;  %5902 = vst [vmem:[#allocation25_spill] sm:$0xff] %v4975_v39  ;;  %v386_v19 = vrot.slane %v4954_v10, 1  ;;  %5904 = vst [vmem:[#allocation27_spill] sm:$0xff] %v5000_v0  ;;  %v5018_v40 = vsel %vm993_vm3, %v1019_v41, %v1020_v13  ;;  %v393_v41 = vrot.slane %v5015_v36, 1 }
  0x40   : > { %5907 = vst [vmem:[#allocation30_spill] sm:$0xff] %v5018_v40 }
  0x41   : > { %v5035_v49 = vsel %vm324_vm1, %v386_v19, %v388_v61  ;;  %v1030_v61 = vrot.slane %v4785_v59, 2 }
  0x42   : > { %3841 = vmatmul.mubr.msk.f32.gmra.mrb[20].mxu1 %vm407_vm2, %v4965_v27  ;;  %4067 = vmatmul.mubr.msk.f32.gmra.mrb[4].mxu0 %vm407_vm2, %v4972_v60  ;;  %v5009_v27 = vsel %vm324_vm1, %v385_v54, %v386_v19  ;;  %v5026_v54 = vld [vmem:[%s4631_s27 + $0x158] sm:$0xff]  ;;  %5908 = vst [vmem:[#allocation31_spill] sm:$0xff] %v5035_v49  ;;  %v5050_v60 = vld [vmem:[%s4631_s27 + $0x160] sm:$0x3]  ;;  %v5053_v19 = vsel %vm993_vm3, %v1024_v62, %v1025_v33 }
  0x43   : > { %3843 = vmatprep.mubr.msk.f32.mxu1 %vm407_vm2, %v4975_v39  ;;  %4069 = vmatprep.mubr.msk.f32.mxu0 %vm407_vm2, %v4983_v37  ;;  %5906 = vst [vmem:[#allocation29_spill] sm:$0xff] %v5009_v27  ;;  %v391_v39 = vrot.slane %v4991_v12, 1  ;;  %v5042_v37 = vsel %vm993_vm3, %v1020_v13, %v1022_v44  ;;  %v5061_v44 = vld [vmem:[%s4631_s27 + $0x170] sm:$0xff]  ;;  %v5073_v13 = vsel %vm993_vm3, %v1025_v33, %v1027_v34  ;;  %v398_v62 = vrot.slane %v5050_v60, 1 }
  0x44   : > { %5909 = vst [vmem:[#allocation32_spill] sm:$0xff] %v5042_v37  ;;  %5911 = vst [vmem:[#allocation34_spill] sm:$0xff] %v5061_v44  ;;  %v1034_v34 = vrot.slane %v4808_v3, 2  ;;  %v1035_v33 = vrot.slane %v4811_v7, 2 }
  0x45   : > { %5913 = vst [vmem:[#allocation36_spill] sm:$0xff] %v5073_v13 }
  0x46   : > { %3844 = vmatmul.mubr.msk.f32.gmra.mrb[22].mxu1 %vm407_vm2, %v5000_v0  ;;  %4070 = vmatmul.mubr.msk.f32.gmra.mrb[6].mxu0 %vm407_vm2, %v5003_v23  ;;  %v5045_v0 = vsel %vm324_vm1, %v390_v38, %v391_v39  ;;  %v395_v23 = vrot.slane %v5023_v20, 1  ;;  %v5070_v38 = vsel %vm324_vm1, %v391_v39, %v393_v41  ;;  %v5088_v39 = vsel %vm993_vm3, %v1029_v57, %v1030_v61 }
  0x47   : > { %3846 = vmatprep.mubr.msk.f32.mxu1 %vm407_vm2, %v5009_v27  ;;  %4072 = vmatprep.mubr.msk.f32.mxu0 %vm407_vm2, %v5018_v40  ;;  %5910 = vst [vmem:[#allocation33_spill] sm:$0xff] %v5045_v0  ;;  %v396_v27 = vrot.slane %v5026_v54, 1  ;;  %v5058_v40 = vld [vmem:[%s4631_s27 + $0x168] sm:$0xff]  ;;  %5912 = vst [vmem:[#allocation35_spill] sm:$0xff] %v5070_v38 }
  0x49   : > { %v5079_v14 = vsel %vm324_vm1, %v395_v23, %v396_v27  ;;  %v403_v23 = vrot.slane %v5085_v48, 1 }
  0x4a   : > { %3847 = vmatmul.mubr.msk.f32.gmra.mrb[24].mxu1 %vm407_vm2, %v5035_v49  ;;  %4073 = vmatmul.mubr.msk.f32.gmra.mrb[8].mxu0 %vm407_vm2, %v5042_v37  ;;  %5914 = vst [vmem:[#allocation37_spill] sm:$0xff] %v5079_v14  ;;  %v1032_v49 = vrot.slane %v4803_v2, 2  ;;  %v400_v37 = vrot.slane %v5058_v40, 1  ;;  %v5099_v2 = vsel %vm324_vm1, %v396_v27, %v398_v62  ;;  %v1040_v27 = vrot.slane %v4852_v29, 2 }
  0x4b   : > { %3849 = vmatprep.mubr.msk.f32.mxu1 %vm407_vm2, %v5045_v0  ;;  %4075 = vmatprep.mubr.msk.f32.mxu0 %vm407_vm2, %v5053_v19  ;;  %v401_v0 = vrot.slane %v5061_v44, 1  ;;  %5915 = vst [vmem:[#allocation38_spill] sm:$0xff] %v5099_v2  ;;  %v1044_v62 = vrot.slane %v4877_v53, 2 }
  0x4c   : > { %v5105_v41 = vsel %vm993_vm3, %v1030_v61, %v1032_v49  ;;  %v1042_v49 = vrot.slane %v4869_v45, 2 }
  0x4d   : > { %v5108_v57 = vsel %vm324_vm1, %v400_v37, %v401_v0  ;;  %v5123_v37 = vsel %vm324_vm1, %v401_v0, %v403_v23  ;;  %v5158_v23 = vld [vmem:[%s5803_s1 + $0xc] sm:$0xf] }
  0x4e   : > { %3850 = vmatmul.mubr.msk.f32.gmra.mrb[26].mxu1 %vm407_vm2, %v5070_v38  ;;  %4076 = vmatmul.mubr.msk.f32.gmra.mrb[10].mxu0 %vm407_vm2, %v5073_v13  ;;  %5916 = vst [vmem:[#allocation39_spill] sm:$0xff] %v5108_v57  ;;  %v1037_v38 = vrot.slane %v4829_v17, 2  ;;  %v5112_v13 = vsel %vm993_vm3, %v1034_v34, %v1035_v33  ;;  %5917 = vst [vmem:[#allocation40_spill] sm:$0xff] %v5123_v37  ;;  %v1045_v34 = vrot.slane %v4880_v55, 2 }
  0x4f   : > { %3852 = vmatprep.mubr.msk.f32.mxu1 %vm407_vm2, %v5079_v14  ;;  %4078 = vmatprep.mubr.msk.f32.mxu0 %vm407_vm2, %v5088_v39  ;;  %v1039_v14 = vrot.slane %v4849_v28, 2  ;;  %v5145_v45 = vsel %vm993_vm3, %v1040_v27, %v1042_v49 }
  0x50   : > { %v5128_v17 = vsel %vm993_vm3, %v1035_v33, %v1037_v38  ;;  %v5149_v0 = vsel %vm993_vm3, %v1044_v62, %v1045_v34  ;;  %v1049_v38 = vrot.slane %v4909_v22, 2  ;;  %v1050_v33 = vrot.slane %v4912_v24, 2 }
  0x51   : > { %v5132_v61 = vsel %vm993_vm3, %v1039_v14, %v1040_v27  ;;  %v1047_v14 = vrot.slane %v4901_v16, 2  ;;  %v1052_v27 = vrot.slane %v4943_v56, 2  ;;  %v1054_v62 = vrot.slane %v4951_v8, 2 }
  0x52   : > { %3853 = vmatmul.mubr.msk.f32.gmra.mrb[28].mxu1 %vm407_vm2, %v5099_v2  ;;  %4079 = vmatmul.mubr.msk.f32.gmra.mrb[12].mxu0 %vm407_vm2, %v5105_v41  ;;  %v5173_v49 = vsel %vm993_vm3, %v1049_v38, %v1050_v33  ;;  %v1059_v38 = vrot.slane %v4988_v46, 2  ;;  %v1070_v2 = vrot.slane %v5061_v44, 2 }
  0x53   : > { %3855 = vmatprep.mubr.msk.f32.mxu1 %vm407_vm2, %v5108_v57  ;;  %4081 = vmatprep.mubr.msk.f32.mxu0 %vm407_vm2, %v5112_v13  ;;  %v5169_v16 = vsel %vm993_vm3, %v1045_v34, %v1047_v14  ;;  %5918 = vst [vmem:[#allocation41_spill] sm:$0xff] %v5173_v49  ;;  %v5188_v56 = vsel %vm993_vm3, %v1050_v33, %v1052_v27  ;;  %v1057_v34 = vrot.slane %v4980_v52, 2  ;;  %v1062_v33 = vrot.slane %v5015_v36, 2 }
  0x54   : > { %v1065_v57 = vrot.slane %v5026_v54, 2 }
  0x56   : > { %3856 = vmatmul.mubr.msk.f32.gmra.mrb[30].mxu1 %vm407_vm2, %v5123_v37  ;;  %4082 = vmatmul.mubr.msk.f32.gmra.mrb[14].mxu0 %vm407_vm2, %v5128_v17  ;;  %v1060_v37 = vrot.slane %v4991_v12, 2 }
  0x57   : > { %3860 = vmatprep.mubr.msk.f32.mxu1 %vm407_vm2, %v4634_v4  ;;  %4084 = vmatprep.mubr.msk.f32.mxu0 %vm407_vm2, %v5132_v61 }
  0x58   : > { %v5209_v27 = vsel %vm993_vm3, %v1059_v38, %v1060_v37  ;;  %v5222_v36 = vsel %vm993_vm3, %v1060_v37, %v1062_v33  ;;  %v1069_v38 = vrot.slane %v5058_v40, 2  ;;  %v1072_v37 = vrot.slane %v5085_v48, 2 }
  0x59   : > { %5920 = vst [vmem:[#allocation43_spill] sm:$0xff] %v5209_v27  ;;  %5921 = vst [vmem:[#allocation44_spill] sm:$0xff] %v5222_v36 }
  0x5a   : > { %3861 = vmatmul.mubr.msk.f32.vlgmr.msra.gmra.mrb[0].mxu1 %vm407_vm2, %v4637_v5  ;;  %4085 = vmatmul.mubr.msk.f32.gmra.mrb[16].mxu0 %vm407_vm2, %v5145_v45  ;;  %v5249_v33 = vsel %vm993_vm3, %v1069_v38, %v1070_v2  ;;  %v5265_v48 = vsel %vm993_vm3, %v1070_v2, %v1072_v37  ;;  %v995_v38 = vrot.slane %v4637_v5, 2  ;;  %v997_v37 = vrot.slane %v4649_v11, 2  ;;  %v5928_v5 = vld [vmem:[#allocation20_spill] sm:$0xff]  ;;  %v5929_v11 = vld [vmem:[#allocation22_spill] sm:$0xff] }
  0x5b   : > { %3909 = vmatpush3.msk.msra.mxu1 %vm472_vm0, %v4706_v35  ;;  %3863 = vmatprep.mubr.msk.f32.mxu1 %vm407_vm2, %v4640_v6  ;;  %v1055_v35 = vrot.slane %v4954_v10, 2  ;;  %v5236_v6 = vld [vmem:[%s4631_s27 + $0x188] sm:$0xff]  ;;  %5924 = vst [vmem:[#allocation47_spill] sm:$0xff] %v5249_v33  ;;  %5925 = vst [vmem:[#allocation48_spill] sm:$0xff] %v5265_v48 }
  0x5c   : > { %4087 = vmatprep.mubr.msk.f32.mxu0 %vm407_vm2, %v5149_v0  ;;  %3958 = vmatprep.subr.msk.mxu1 %vm472_vm0, %v5158_v23 }
  0x5d   : > { %v5192_v14 = vsel %vm993_vm3, %v1054_v62, %v1055_v35  ;;  %v5205_v52 = vsel %vm993_vm3, %v1055_v35, %v1057_v34  ;;  %v1064_v62 = vrot.slane %v5023_v20, 2  ;;  %v1067_v35 = vrot.slane %v5050_v60, 2 }
  0x5e   : > { %3864 = vmatmul.mubr.msk.f32.gmra.mrb[2].mxu1 %vm407_vm2, %v4645_v9  ;;  %4088 = vmatmul.mubr.msk.f32.gmra.mrb[18].mxu0 %vm407_vm2, %v5169_v16  ;;  %5919 = vst [vmem:[#allocation42_spill] sm:$0xff] %v5205_v52  ;;  %v5233_v9 = vld [vmem:[%s4631_s27 + $0x180] sm:$0xff] }
  0x5f   : > { %3866 = vmatprep.mubr.msk.f32.mxu1 %vm407_vm2, %v4657_v15  ;;  %4090 = vmatprep.mubr.msk.f32.mxu0 %vm407_vm2, %v5173_v49  ;;  %v5226_v34 = vsel %vm993_vm3, %v1064_v62, %v1065_v57  ;;  %v5245_v60 = vsel %vm993_vm3, %v1065_v57, %v1067_v35  ;;  %v1940_v62 = vrot.slane %v5233_v9, 2 }
  0x60   : > { %5922 = vst [vmem:[#allocation45_spill] sm:$0xff] %v5226_v34  ;;  %5923 = vst [vmem:[#allocation46_spill] sm:$0xff] %v5245_v60 }
  0x62   : > { %3867 = vmatmul.mubr.msk.f32.gmra.mrb[4].mxu1 %vm407_vm2, %v4662_v18  ;;  %4091 = vmatmul.mubr.msk.f32.gmra.mrb[20].mxu0 %vm407_vm2, %v5188_v56 }
  0x63   : > { %3869 = vmatprep.mubr.msk.f32.mxu1 %vm407_vm2, %v4674_v25  ;;  %4093 = vmatprep.mubr.msk.f32.mxu0 %vm407_vm2, %v5192_v14 }
  0x66   : > { %3870 = vmatmul.mubr.msk.f32.gmra.mrb[6].mxu1 %vm407_vm2, %v4677_v26  ;;  %4094 = vmatmul.mubr.msk.f32.gmra.mrb[22].mxu0 %vm407_vm2, %v5205_v52  ;;  %v5254_v52 = vld [vmem:[%s4631_s27 + $0x190] sm:$0x3] }
  0x67   : > { %3872 = vmatprep.mubr.msk.f32.mxu1 %vm407_vm2, %v4688_v31  ;;  %4096 = vmatprep.mubr.msk.f32.mxu0 %vm407_vm2, %v5209_v27  ;;  %v1941_v27 = vrot.slane %v5236_v6, 2  ;;  %v1943_v57 = vrot.slane %v5254_v52, 2 }
  0x69   : > { %v5269_v35 = vsel %vm993_vm3, %v1940_v62, %v1941_v27  ;;  %v5280_v2 = vsel %vm993_vm3, %v1941_v27, %v1943_v57  ;;  %v5295_v27 = vld [vmem:[%s5803_s1 + $0x20] sm:$0xf] }
  0x6a   : > { %3873 = vmatmul.mubr.msk.f32.gmra.mrb[8].mxu1 %vm407_vm2, %v4691_v32  ;;  %4097 = vmatmul.mubr.msk.f32.gmra.mrb[24].mxu0 %vm407_vm2, %v5222_v36  ;;  %5926 = vst [vmem:[#allocation49_spill] sm:$0xff] %v5269_v35  ;;  %5927 = vst [vmem:[#allocation50_spill] sm:$0xff] %v5280_v2  ;;  %v5933_v57 = vld [vmem:[#allocation30_spill] sm:$0xff] }
  0x6b   : > { %3875 = vmatprep.mubr.msk.f32.mxu1 %vm407_vm2, %v4728_v42  ;;  %4099 = vmatprep.mubr.msk.f32.mxu0 %vm407_vm2, %v5226_v34 }
  0x6e   : > { %3876 = vmatmul.mubr.msk.f32.gmra.mrb[10].mxu1 %vm407_vm2, %v4731_v43  ;;  %4100 = vmatmul.mubr.msk.f32.gmra.mrb[26].mxu0 %vm407_vm2, %v5245_v60 }
  0x6f   : > { %3878 = vmatprep.mubr.msk.f32.mxu1 %vm407_vm2, %v4756_v50  ;;  %4102 = vmatprep.mubr.msk.f32.mxu0 %vm407_vm2, %v5249_v33 }
  0x72   : > { %3879 = vmatmul.mubr.msk.f32.gmra.mrb[12].mxu1 %vm407_vm2, %v4759_v51  ;;  %4103 = vmatmul.mubr.msk.f32.gmra.mrb[28].mxu0 %vm407_vm2, %v5265_v48 }
  0x73   : > { %3881 = vmatprep.mubr.msk.f32.mxu1 %vm407_vm2, %v4782_v58  ;;  %4105 = vmatprep.mubr.msk.f32.mxu0 %vm407_vm2, %v5269_v35  ;;  %v5938_v35 = vld [vmem:[#allocation6_spill] sm:$0xff] }
  0x76   : > { %3882 = vmatmul.mubr.msk.f32.gmra.mrb[14].mxu1 %vm407_vm2, %v4785_v59  ;;  %4106 = vmatmul.mubr.msk.f32.gmra.mrb[30].mxu0 %vm407_vm2, %v5280_v2  ;;  %v5937_v2 = vld [vmem:[#allocation5_spill] sm:$0xff] }
  0x77   : > { %3884 = vmatprep.mubr.msk.f32.mxu1 %vm407_vm2, %v4808_v3  ;;  %4110 = vmatprep.mubr.msk.f32.mxu0 %vm407_vm2, %v4657_v15 }
  0x7a   : > { %3885 = vmatmul.mubr.msk.f32.gmra.mrb[16].mxu1 %vm407_vm2, %v4811_v7  ;;  %4111 = vmatmul.mubr.msk.f32.vlgmr.msra.gmra.mrb[0].mxu0 %vm407_vm2, %v4662_v18 }
  0x7b   : > { %3887 = vmatprep.mubr.msk.f32.mxu1 %vm407_vm2, %v4849_v28  ;;  %4159 = vmatpush3.msk.msra.mxu0 %vm472_vm0, %v4919_v30  ;;  %v994_v30 = vrot.slane %v4634_v4, 2  ;;  %v998_v4 = vsel %vm993_vm3, %v995_v38, %v997_v37  ;;  %v5935_v37 = vld [vmem:[#allocation36_spill] sm:$0xff] }
  0x7c   : > { %4113 = vmatprep.mubr.msk.f32.mxu0 %vm407_vm2, %v4674_v25  ;;  %4208 = vmatprep.subr.msk.mxu0 %vm472_vm0, %v5295_v27 }
  0x7d   : > { %v996_v62 = vsel %vm993_vm3, %v994_v30, %v995_v38  ;;  %v5934_v30 = vld [vmem:[#allocation32_spill] sm:$0xff]  ;;  %v5419_v38 = vld [vmem:[%s4631_s27 + $0x198] sm:$0xff] }
  0x7e   : > { %3888 = vmatmul.mubr.msk.f32.gmra.mrb[18].mxu1 %vm407_vm2, %v4852_v29  ;;  %4114 = vmatmul.mubr.msk.f32.gmra.mrb[2].mxu0 %vm407_vm2, %v4677_v26 }
  0x7f   : > { %3890 = vmatprep.mubr.msk.f32.mxu1 %vm407_vm2, %v4877_v53  ;;  %4116 = vmatprep.mubr.msk.f32.mxu0 %vm407_vm2, %v4688_v31 }
  0x82   : > { %3891 = vmatmul.mubr.msk.f32.gmra.mrb[20].mxu1 %vm407_vm2, %v4880_v55  ;;  %4117 = vmatmul.mubr.msk.f32.gmra.mrb[4].mxu0 %vm407_vm2, %v4691_v32 }
  0x83   : > { %3893 = vmatprep.mubr.msk.f32.mxu1 %vm407_vm2, %v4909_v22  ;;  %4119 = vmatprep.mubr.msk.f32.mxu0 %vm407_vm2, %v4728_v42 }
  0x86   : > { %3894 = vmatmul.mubr.msk.f32.gmra.mrb[22].mxu1 %vm407_vm2, %v4912_v24  ;;  %4120 = vmatmul.mubr.msk.f32.gmra.mrb[6].mxu0 %vm407_vm2, %v4731_v43 }
  0x87   : > { %3896 = vmatprep.mubr.msk.f32.mxu1 %vm407_vm2, %v4951_v8  ;;  %4122 = vmatprep.mubr.msk.f32.mxu0 %vm407_vm2, %v4756_v50 }
  0x8a   : > { %3897 = vmatmul.mubr.msk.f32.gmra.mrb[24].mxu1 %vm407_vm2, %v4954_v10  ;;  %4123 = vmatmul.mubr.msk.f32.gmra.mrb[8].mxu0 %vm407_vm2, %v4759_v51 }
  0x8b   : > { %3899 = vmatprep.mubr.msk.f32.mxu1 %vm407_vm2, %v4988_v46  ;;  %4125 = vmatprep.mubr.msk.f32.mxu0 %vm407_vm2, %v4782_v58 }
  0x8e   : > { %3900 = vmatmul.mubr.msk.f32.gmra.mrb[26].mxu1 %vm407_vm2, %v4991_v12  ;;  %4126 = vmatmul.mubr.msk.f32.gmra.mrb[10].mxu0 %vm407_vm2, %v4785_v59 }
  0x8f   : > { %3902 = vmatprep.mubr.msk.f32.mxu1 %vm407_vm2, %v5023_v20  ;;  %4128 = vmatprep.mubr.msk.f32.mxu0 %vm407_vm2, %v4808_v3 }
  0x92   : > { %3903 = vmatmul.mubr.msk.f32.gmra.mrb[28].mxu1 %vm407_vm2, %v5026_v54  ;;  %4129 = vmatmul.mubr.msk.f32.gmra.mrb[12].mxu0 %vm407_vm2, %v4811_v7 }
  0x93   : > { %3905 = vmatprep.mubr.msk.f32.mxu1 %vm407_vm2, %v5058_v40  ;;  %4131 = vmatprep.mubr.msk.f32.mxu0 %vm407_vm2, %v4849_v28 }
  0x96   : > { %3906 = vmatmul.mubr.msk.f32.gmra.mrb[30].mxu1 %vm407_vm2, %v5061_v44  ;;  %4132 = vmatmul.mubr.msk.f32.gmra.mrb[14].mxu0 %vm407_vm2, %v4852_v29 }
  0x97   : > { %3910 = vmatprep.mubr.msk.f32.mxu1 %vm407_vm2, %v996_v62  ;;  %4134 = vmatprep.mubr.msk.f32.mxu0 %vm407_vm2, %v4877_v53  ;;  %v5430_v62 = vld [vmem:[%s4631_s27 + $0x1a0] sm:$0xff] }
  0x9a   : > { %3911 = vmatmul.mubr.msk.f32.vlgmr.msra.gmra.mrb[0].mxu1 %vm407_vm2, %v998_v4  ;;  %4135 = vmatmul.mubr.msk.f32.gmra.mrb[16].mxu0 %vm407_vm2, %v4880_v55  ;;  %v5936_v4 = vld [vmem:[#allocation4_spill] sm:$0xff] }
  0x9b   : > { %3959 = vmatpush3.msk.msra.mxu1 %vm472_vm0, %v5158_v23  ;;  %3913 = vmatprep.mubr.msk.f32.mxu1 %vm407_vm2, %v4872_v47  ;;  %v5930_v47 = vld [vmem:[#allocation24_spill] sm:$0xff] }
  0x9c   : > { %4137 = vmatprep.mubr.msk.f32.mxu0 %vm407_vm2, %v4909_v22  ;;  %4258 = vmatprep.subr.msk.mxu1 %vm472_vm0, %v4609_v1  ;;  %v5932_v23 = vld [vmem:[#allocation28_spill] sm:$0xff] }
  0x9e   : > { %3914 = vmatmul.mubr.msk.f32.gmra.mrb[2].mxu1 %vm407_vm2, %v4893_v63  ;;  %4138 = vmatmul.mubr.msk.f32.gmra.mrb[18].mxu0 %vm407_vm2, %v4912_v24  ;;  %v5931_v63 = vld [vmem:[#allocation26_spill] sm:$0xff] }
  0x9f   : > { %3916 = vmatprep.mubr.msk.f32.mxu1 %vm407_vm2, %v4904_v21  ;;  %4140 = vmatprep.mubr.msk.f32.mxu0 %vm407_vm2, %v4951_v8 }
  0xa2   : > { %3917 = vmatmul.mubr.msk.f32.gmra.mrb[4].mxu1 %vm407_vm2, %v5928_v5  ;;  %4141 = vmatmul.mubr.msk.f32.gmra.mrb[20].mxu0 %vm407_vm2, %v4954_v10 }
  0xa3   : > { %3919 = vmatprep.mubr.msk.f32.mxu1 %vm407_vm2, %v5929_v11  ;;  %4143 = vmatprep.mubr.msk.f32.mxu0 %vm407_vm2, %v4988_v46 }
  0xa6   : > { %3920 = vmatmul.mubr.msk.f32.gmra.mrb[6].mxu1 %vm407_vm2, %v5930_v47  ;;  %4144 = vmatmul.mubr.msk.f32.gmra.mrb[22].mxu0 %vm407_vm2, %v4991_v12 }
  0xa7   : > { %3922 = vmatprep.mubr.msk.f32.mxu1 %vm407_vm2, %v5931_v63  ;;  %4146 = vmatprep.mubr.msk.f32.mxu0 %vm407_vm2, %v5023_v20 }
  0xaa   : > { %3923 = vmatmul.mubr.msk.f32.gmra.mrb[8].mxu1 %vm407_vm2, %v5932_v23  ;;  %4147 = vmatmul.mubr.msk.f32.gmra.mrb[24].mxu0 %vm407_vm2, %v5026_v54 }
  0xab   : > { %3925 = vmatprep.mubr.msk.f32.mxu1 %vm407_vm2, %v5933_v57  ;;  %4149 = vmatprep.mubr.msk.f32.mxu0 %vm407_vm2, %v5058_v40 }
  0xae   : > { %3926 = vmatmul.mubr.msk.f32.gmra.mrb[10].mxu1 %vm407_vm2, %v5934_v30  ;;  %4150 = vmatmul.mubr.msk.f32.gmra.mrb[26].mxu0 %vm407_vm2, %v5061_v44  ;;  %v5939_v44 = vld [vmem:[#allocation7_spill] sm:$0xff] }
  0xaf   : > { %3928 = vmatprep.mubr.msk.f32.mxu1 %vm407_vm2, %v5053_v19  ;;  %4152 = vmatprep.mubr.msk.f32.mxu0 %vm407_vm2, %v5233_v9 }
  0xb2   : > { %3929 = vmatmul.mubr.msk.f32.gmra.mrb[12].mxu1 %vm407_vm2, %v5935_v37  ;;  %4153 = vmatmul.mubr.msk.f32.gmra.mrb[28].mxu0 %vm407_vm2, %v5236_v6 }
  0xb3   : > { %3931 = vmatprep.mubr.msk.f32.mxu1 %vm407_vm2, %v5088_v39  ;;  %4155 = vmatprep.mubr.msk.f32.mxu0 %vm407_vm2, %v5419_v38 }
  0xb6   : > { %3932 = vmatmul.mubr.msk.f32.gmra.mrb[14].mxu1 %vm407_vm2, %v5105_v41  ;;  %4156 = vmatmul.mubr.msk.f32.gmra.mrb[30].mxu0 %vm407_vm2, %v5430_v62 }
  0xb7   : > { %3934 = vmatprep.mubr.msk.f32.mxu1 %vm407_vm2, %v5112_v13  ;;  %4160 = vmatprep.mubr.msk.f32.mxu0 %vm407_vm2, %v5936_v4  ;;  %v5940_v4 = vld [vmem:[#allocation8_spill] sm:$0xff] }
  0xba   : > { %3935 = vmatmul.mubr.msk.f32.gmra.mrb[16].mxu1 %vm407_vm2, %v5128_v17  ;;  %4161 = vmatmul.mubr.msk.f32.vlgmr.msra.gmra.mrb[0].mxu0 %vm407_vm2, %v5937_v2  ;;  %v5941_v2 = vld [vmem:[#allocation9_spill] sm:$0xff] }
  0xbb   : > { %3937 = vmatprep.mubr.msk.f32.mxu1 %vm407_vm2, %v5132_v61  ;;  %4209 = vmatpush3.msk.msra.mxu0 %vm472_vm0, %v5295_v27  ;;  %v5944_v27 = vld [vmem:[#allocation12_spill] sm:$0xff] }
  0xbc   : > { %4163 = vmatprep.mubr.msk.f32.mxu0 %vm407_vm2, %v5938_v35  ;;  %v5942_v35 = vld [vmem:[#allocation10_spill] sm:$0xff] }
  0xbe   : > { %3938 = vmatmul.mubr.msk.f32.gmra.mrb[18].mxu1 %vm407_vm2, %v5145_v45  ;;  %4164 = vmatmul.mubr.msk.f32.gmra.mrb[2].mxu0 %vm407_vm2, %v5939_v44  ;;  %v5943_v44 = vld [vmem:[#allocation11_spill] sm:$0xff] }
  0xbf   : > { %3940 = vmatprep.mubr.msk.f32.mxu1 %vm407_vm2, %v5149_v0  ;;  %4166 = vmatprep.mubr.msk.f32.mxu0 %vm407_vm2, %v5940_v4  ;;  %v5945_v4 = vld [vmem:[#allocation42_spill] sm:$0xff] }
  0xc2   : > { %3941 = vmatmul.mubr.msk.f32.gmra.mrb[20].mxu1 %vm407_vm2, %v5169_v16  ;;  %4167 = vmatmul.mubr.msk.f32.gmra.mrb[4].mxu0 %vm407_vm2, %v5941_v2  ;;  %v5946_v2 = vld [vmem:[#allocation13_spill] sm:$0xff] }
  0xc3   : > { %3943 = vmatprep.mubr.msk.f32.mxu1 %vm407_vm2, %v5173_v49  ;;  %4169 = vmatprep.mubr.msk.f32.mxu0 %vm407_vm2, %v5942_v35  ;;  %v5947_v49 = vld [vmem:[#allocation43_spill] sm:$0xff]  ;;  %v5948_v35 = vld [vmem:[#allocation14_spill] sm:$0xff] }
  0xc6   : > { %3944 = vmatmul.mubr.msk.f32.gmra.mrb[22].mxu1 %vm407_vm2, %v5188_v56  ;;  %4170 = vmatmul.mubr.msk.f32.gmra.mrb[6].mxu0 %vm407_vm2, %v5943_v44  ;;  %v5949_v44 = vld [vmem:[#allocation15_spill] sm:$0xff] }
  0xc7   : > { %3946 = vmatprep.mubr.msk.f32.mxu1 %vm407_vm2, %v5192_v14  ;;  %4172 = vmatprep.mubr.msk.f32.mxu0 %vm407_vm2, %v5944_v27  ;;  %v5950_v27 = vld [vmem:[#allocation16_spill] sm:$0xff] }
  0xca   : > { %3947 = vmatmul.mubr.msk.f32.gmra.mrb[24].mxu1 %vm407_vm2, %v5945_v4  ;;  %4173 = vmatmul.mubr.msk.f32.gmra.mrb[8].mxu0 %vm407_vm2, %v5946_v2  ;;  %v5951_v2 = vld [vmem:[#allocation17_spill] sm:$0xff] }
  0xcb   : > { %3949 = vmatprep.mubr.msk.f32.mxu1 %vm407_vm2, %v5947_v49  ;;  %4175 = vmatprep.mubr.msk.f32.mxu0 %vm407_vm2, %v5948_v35  ;;  %v5952_v35 = vld [vmem:[#allocation18_spill] sm:$0xff] }
  0xce   : > { %3950 = vmatmul.mubr.msk.f32.gmra.mrb[26].mxu1 %vm407_vm2, %v5222_v36  ;;  %4176 = vmatmul.mubr.msk.f32.gmra.mrb[10].mxu0 %vm407_vm2, %v5949_v44  ;;  %v5953_v44 = vld [vmem:[#allocation19_spill] sm:$0xff] }
  0xcf   : > { %3952 = vmatprep.mubr.msk.f32.mxu1 %vm407_vm2, %v5226_v34  ;;  %4178 = vmatprep.mubr.msk.f32.mxu0 %vm407_vm2, %v5950_v27  ;;  %v5954_v34 = vld [vmem:[#allocation2_spill] sm:$0xff]  ;;  %v5955_v27 = vld [vmem:[#allocation21_spill] sm:$0xff]  ;;  %v5557_v36 = vld [vmem:[%s4631_s27 + $0x1a8] sm:$0x3] }
  0xd2   : > { %3953 = vmatmul.mubr.msk.f32.gmra.mrb[28].mxu1 %vm407_vm2, %v5245_v60  ;;  %4179 = vmatmul.mubr.msk.f32.gmra.mrb[12].mxu0 %vm407_vm2, %v5951_v2  ;;  %v5956_v60 = vld [vmem:[#allocation3_spill] sm:$0xff] }
  0xd3   : > { %3955 = vmatprep.mubr.msk.f32.mxu1 %vm407_vm2, %v5249_v33  ;;  %4181 = vmatprep.mubr.msk.f32.mxu0 %vm407_vm2, %v5952_v35  ;;  %v5957_v2 = vld [vmem:[#allocation23_spill] sm:$0xff]  ;;  %v5965_v33 = vld [vmem:[#allocation38_spill] sm:$0xff] }
  0xd6   : > { %3956 = vmatmul.mubr.msk.f32.gmra.mrb[30].mxu1 %vm407_vm2, %v5265_v48  ;;  %4182 = vmatmul.mubr.msk.f32.gmra.mrb[14].mxu0 %vm407_vm2, %v5953_v44  ;;  %v5958_v48 = vld [vmem:[#allocation25_spill] sm:$0xff] }
  0xd7   : > { %3960 = vmatprep.mubr.msk.f32.mxu1 %vm407_vm2, %v5954_v34  ;;  %4184 = vmatprep.mubr.msk.f32.mxu0 %vm407_vm2, %v5955_v27  ;;  %v5959_v34 = vld [vmem:[#allocation27_spill] sm:$0xff] }
  0xda   : > { %3961 = vmatmul.mubr.msk.f32.vlgmr.msra.gmra.mrb[0].mxu1 %vm407_vm2, %v5956_v60  ;;  %4185 = vmatmul.mubr.msk.f32.gmra.mrb[16].mxu0 %vm407_vm2, %v5957_v2  ;;  %v5960_v60 = vld [vmem:[#allocation29_spill] sm:$0xff] }
  0xdb   : > { %4259 = vmatpush3.msk.msra.mxu1 %vm472_vm0, %v4609_v1  ;;  %3963 = vmatprep.mubr.msk.f32.mxu1 %vm407_vm2, %v4657_v15  ;;  %v5961_v1 = vld [vmem:[#allocation31_spill] sm:$0xff]  ;;  %v5962_v15 = vld [vmem:[#allocation33_spill] sm:$0xff] }
  0xdc   : > { %4187 = vmatprep.mubr.msk.f32.mxu0 %vm407_vm2, %v5958_v48 }
  0xde   : > { %3964 = vmatmul.mubr.msk.f32.gmra.mrb[2].mxu1 %vm407_vm2, %v4662_v18  ;;  %4188 = vmatmul.mubr.msk.f32.gmra.mrb[18].mxu0 %vm407_vm2, %v5959_v34  ;;  %v5963_v18 = vld [vmem:[#allocation35_spill] sm:$0xff] }
  0xdf   : > { %3966 = vmatprep.mubr.msk.f32.mxu1 %vm407_vm2, %v4674_v25  ;;  %4190 = vmatprep.mubr.msk.f32.mxu0 %vm407_vm2, %v5960_v60  ;;  %v5964_v25 = vld [vmem:[#allocation37_spill] sm:$0xff] }
  0xe2   : > { %3967 = vmatmul.mubr.msk.f32.gmra.mrb[4].mxu1 %vm407_vm2, %v4677_v26  ;;  %4191 = vmatmul.mubr.msk.f32.gmra.mrb[20].mxu0 %vm407_vm2, %v5961_v1  ;;  %v1669_v26 = vrot.slane %v5233_v9, 1 }
  0xe3   : > { %3969 = vmatprep.mubr.msk.f32.mxu1 %vm407_vm2, %v4688_v31  ;;  %4193 = vmatprep.mubr.msk.f32.mxu0 %vm407_vm2, %v5962_v15  ;;  %v1670_v31 = vrot.slane %v5236_v6, 1 }
  0xe5   : > { %v5554_v15 = vsel %vm324_vm1, %v1669_v26, %v1670_v31 }
  0xe6   : > { %3970 = vmatmul.mubr.msk.f32.gmra.mrb[6].mxu1 %vm407_vm2, %v4691_v32  ;;  %4194 = vmatmul.mubr.msk.f32.gmra.mrb[22].mxu0 %vm407_vm2, %v5963_v18  ;;  %v5966_v32 = vld [vmem:[#allocation39_spill] sm:$0xff]  ;;  %v2481_v18 = vrot.slane %v5430_v62, 1 }
  0xe7   : > { %3972 = vmatprep.mubr.msk.f32.mxu1 %vm407_vm2, %v4728_v42  ;;  %4196 = vmatprep.mubr.msk.f32.mxu0 %vm407_vm2, %v5964_v25  ;;  %v1672_v42 = vrot.slane %v5254_v52, 1  ;;  %v2480_v25 = vrot.slane %v5419_v38, 1  ;;  %v2483_v52 = vrot.slane %v5557_v36, 1 }
  0xe9   : > { %v2482_v26 = vsel %vm324_vm1, %v2480_v25, %v2481_v18 }
  0xea   : > { %3973 = vmatmul.mubr.msk.f32.gmra.mrb[8].mxu1 %vm407_vm2, %v4731_v43  ;;  %4197 = vmatmul.mubr.msk.f32.gmra.mrb[24].mxu0 %vm407_vm2, %v5965_v33  ;;  %v5967_v43 = vld [vmem:[#allocation40_spill] sm:$0xff] }
  0xeb   : > { %3975 = vmatprep.mubr.msk.f32.mxu1 %vm407_vm2, %v4756_v50  ;;  %4199 = vmatprep.mubr.msk.f32.mxu0 %vm407_vm2, %v5966_v32  ;;  %v5568_v50 = vsel %vm324_vm1, %v1670_v31, %v1672_v42 }
  0xee   : > { %3976 = vmatmul.mubr.msk.f32.gmra.mrb[10].mxu1 %vm407_vm2, %v4759_v51  ;;  %4200 = vmatmul.mubr.msk.f32.gmra.mrb[26].mxu0 %vm407_vm2, %v5967_v43  ;;  %v2484_v51 = vsel %vm324_vm1, %v2481_v18, %v2483_v52 }
  0xef   : > { %3978 = vmatprep.mubr.msk.f32.mxu1 %vm407_vm2, %v4782_v58  ;;  %4202 = vmatprep.mubr.msk.f32.mxu0 %vm407_vm2, %v5554_v15  ;;  %v5971_v58 = vld [vmem:[#allocation33_spill] sm:$0xff] }
  0xf2   : > { %3979 = vmatmul.mubr.msk.f32.gmra.mrb[12].mxu1 %vm407_vm2, %v4785_v59  ;;  %4203 = vmatmul.mubr.msk.f32.gmra.mrb[28].mxu0 %vm407_vm2, %v5568_v50  ;;  %v5972_v59 = vld [vmem:[#allocation45_spill] sm:$0xff] }
  0xf3   : > { %3981 = vmatprep.mubr.msk.f32.mxu1 %vm407_vm2, %v4808_v3  ;;  %4205 = vmatprep.mubr.msk.f32.mxu0 %vm407_vm2, %v2482_v26  ;;  %v5973_v3 = vld [vmem:[#allocation35_spill] sm:$0xff] }
  0xf6   : > { %3982 = vmatmul.mubr.msk.f32.gmra.mrb[14].mxu1 %vm407_vm2, %v4811_v7  ;;  %4206 = vmatmul.mubr.msk.f32.gmra.mrb[30].mxu0 %vm407_vm2, %v2484_v51  ;;  %v5974_v7 = vld [vmem:[#allocation46_spill] sm:$0xff] }
  0xf7   : > { %3984 = vmatprep.mubr.msk.f32.mxu1 %vm407_vm2, %v4849_v28  ;;  %4210 = vmatprep.mubr.msk.f32.mxu0 %vm407_vm2, %v4904_v21  ;;  %v2751_v28 = vrot.slane %v5419_v38, 2  ;;  %v2754_v21 = vrot.slane %v5557_v36, 2 }
  0xfa   : > { %3985 = vmatmul.mubr.msk.f32.gmra.mrb[16].mxu1 %vm407_vm2, %v4852_v29  ;;  %4211 = vmatmul.mubr.msk.f32.vlgmr.msra.gmra.mrb[0].mxu0 %vm407_vm2, %v5928_v5  ;;  %v2752_v29 = vrot.slane %v5430_v62, 2 }
  0xfb   : > { %3987 = vmatprep.mubr.msk.f32.mxu1 %vm407_vm2, %v4877_v53  ;;  %4213 = vmatprep.mubr.msk.f32.mxu0 %vm407_vm2, %v5929_v11  ;;  %v5977_v53 = vld [vmem:[#allocation48_spill] sm:$0xff] }
  0xfe   : > { %3988 = vmatmul.mubr.msk.f32.gmra.mrb[18].mxu1 %vm407_vm2, %v4880_v55  ;;  %4214 = vmatmul.mubr.msk.f32.gmra.mrb[2].mxu0 %vm407_vm2, %v5930_v47  ;;  %v5978_v55 = vld [vmem:[#allocation49_spill] sm:$0xff] }
  0xff   : > { %3990 = vmatprep.mubr.msk.f32.mxu1 %vm407_vm2, %v4909_v22  ;;  %4216 = vmatprep.mubr.msk.f32.mxu0 %vm407_vm2, %v5931_v63  ;;  %v5976_v22 = vld [vmem:[#allocation47_spill] sm:$0xff] }
 0x102   : > { %3991 = vmatmul.mubr.msk.f32.gmra.mrb[20].mxu1 %vm407_vm2, %v4912_v24  ;;  %4217 = vmatmul.mubr.msk.f32.gmra.mrb[4].mxu0 %vm407_vm2, %v5932_v23  ;;  %v2753_v24 = vsel %vm993_vm3, %v2751_v28, %v2752_v29 }
 0x103   : > { %3993 = vmatprep.mubr.msk.f32.mxu1 %vm407_vm2, %v4951_v8  ;;  %4219 = vmatprep.mubr.msk.f32.mxu0 %vm407_vm2, %v5933_v57  ;;  %v5975_v8 = vld [vmem:[#allocation37_spill] sm:$0xff] }
 0x106   : > { %3994 = vmatmul.mubr.msk.f32.gmra.mrb[22].mxu1 %vm407_vm2, %v4954_v10  ;;  %4220 = vmatmul.mubr.msk.f32.gmra.mrb[6].mxu0 %vm407_vm2, %v5934_v30  ;;  %v5979_v10 = vld [vmem:[#allocation50_spill] sm:$0xff] }
 0x107   : > { %3996 = vmatprep.mubr.msk.f32.mxu1 %vm407_vm2, %v4988_v46  ;;  %4222 = vmatprep.mubr.msk.f32.mxu0 %vm407_vm2, %v5053_v19  ;;  %v5968_v46 = vld [vmem:[#allocation34_spill] sm:$0xff] }
 0x10a   : > { %3997 = vmatmul.mubr.msk.f32.gmra.mrb[24].mxu1 %vm407_vm2, %v4991_v12  ;;  %4223 = vmatmul.mubr.msk.f32.gmra.mrb[8].mxu0 %vm407_vm2, %v5935_v37  ;;  %v2755_v12 = vsel %vm993_vm3, %v2752_v29, %v2754_v21 }
 0x10b   : > { %3999 = vmatprep.mubr.msk.f32.mxu1 %vm407_vm2, %v5023_v20  ;;  %4225 = vmatprep.mubr.msk.f32.mxu0 %vm407_vm2, %v5088_v39 }
 0x10e   : > { %4000 = vmatmul.mubr.msk.f32.gmra.mrb[26].mxu1 %vm407_vm2, %v5026_v54  ;;  %4226 = vmatmul.mubr.msk.f32.gmra.mrb[10].mxu0 %vm407_vm2, %v5105_v41 }
 0x10f   : > { %4002 = vmatprep.mubr.msk.f32.mxu1 %vm407_vm2, %v5058_v40  ;;  %4228 = vmatprep.mubr.msk.f32.mxu0 %vm407_vm2, %v5112_v13 }
 0x112   : > { %4003 = vmatmul.mubr.msk.f32.gmra.mrb[28].mxu1 %vm407_vm2, %v5968_v46  ;;  %4229 = vmatmul.mubr.msk.f32.gmra.mrb[12].mxu0 %vm407_vm2, %v5128_v17 }
 0x113   : > { %4005 = vmatprep.mubr.msk.f32.mxu1 %vm407_vm2, %v5233_v9  ;;  %4231 = vmatprep.mubr.msk.f32.mxu0 %vm407_vm2, %v5132_v61  ;;  %v5969_v9 = vld [vmem:[#allocation41_spill] sm:$0xff] }
 0x116   : > { %4006 = vmatmul.mubr.msk.f32.gmra.mrb[30].mxu1 %vm407_vm2, %v5236_v6  ;;  %4232 = vmatmul.mubr.msk.f32.gmra.mrb[14].mxu0 %vm407_vm2, %v5145_v45  ;;  %v5970_v6 = vld [vmem:[#allocation44_spill] sm:$0xff] }
 0x117   : > { %4034 = vmatprep.mubr.msk.f32.mxu1 %vm407_vm2, %v5952_v35  ;;  %4234 = vmatprep.mubr.msk.f32.mxu0 %vm407_vm2, %v5149_v0 }
 0x11a   : > { %4035 = vmatmul.mubr.msk.f32.vlgmr.msra.gmra.mrb[16].mxu1 %vm407_vm2, %v5953_v44  ;;  %4235 = vmatmul.mubr.msk.f32.gmra.mrb[16].mxu0 %vm407_vm2, %v5169_v16 }
 0x11b   : > { %4037 = vmatprep.mubr.msk.f32.mxu1 %vm407_vm2, %v5955_v27  ;;  %4237 = vmatprep.mubr.msk.f32.mxu0 %vm407_vm2, %v5969_v9 }
 0x11e   : > { %4038 = vmatmul.mubr.msk.f32.gmra.mrb[18].mxu1 %vm407_vm2, %v5957_v2  ;;  %4238 = vmatmul.mubr.msk.f32.gmra.mrb[18].mxu0 %vm407_vm2, %v5188_v56 }
 0x11f   : > { %4040 = vmatprep.mubr.msk.f32.mxu1 %vm407_vm2, %v5958_v48  ;;  %4240 = vmatprep.mubr.msk.f32.mxu0 %vm407_vm2, %v5192_v14  ;;  %v5721_v48 = vld [vmem:[%s211_s17] ss:$0 sm:$0xff] }
 0x122   : > { %4041 = vmatmul.mubr.msk.f32.gmra.mrb[20].mxu1 %vm407_vm2, %v5959_v34  ;;  %4241 = vmatmul.mubr.msk.f32.gmra.mrb[20].mxu0 %vm407_vm2, %v5945_v4 }
 0x123   : > { %4043 = vmatprep.mubr.msk.f32.mxu1 %vm407_vm2, %v5960_v60  ;;  %4243 = vmatprep.mubr.msk.f32.mxu0 %vm407_vm2, %v5947_v49 }
 0x126   : > { %4044 = vmatmul.mubr.msk.f32.gmra.mrb[22].mxu1 %vm407_vm2, %v5961_v1  ;;  %4244 = vmatmul.mubr.msk.f32.gmra.mrb[22].mxu0 %vm407_vm2, %v5970_v6 }
 0x127   : > { %4046 = vmatprep.mubr.msk.f32.mxu1 %vm407_vm2, %v5971_v58  ;;  %4246 = vmatprep.mubr.msk.f32.mxu0 %vm407_vm2, %v5972_v59 }
 0x12a   : > { %4047 = vmatmul.mubr.msk.f32.gmra.mrb[24].mxu1 %vm407_vm2, %v5973_v3  ;;  %4247 = vmatmul.mubr.msk.f32.gmra.mrb[24].mxu0 %vm407_vm2, %v5974_v7 }
 0x12b   : > { %4049 = vmatprep.mubr.msk.f32.mxu1 %vm407_vm2, %v5975_v8  ;;  %4249 = vmatprep.mubr.msk.f32.mxu0 %vm407_vm2, %v5976_v22 }
 0x12e   : > { %4050 = vmatmul.mubr.msk.f32.gmra.mrb[26].mxu1 %vm407_vm2, %v5965_v33  ;;  %4250 = vmatmul.mubr.msk.f32.gmra.mrb[26].mxu0 %vm407_vm2, %v5977_v53 }
 0x12f   : > { %4052 = vmatprep.mubr.msk.f32.mxu1 %vm407_vm2, %v5966_v32  ;;  %4252 = vmatprep.mubr.msk.f32.mxu0 %vm407_vm2, %v5978_v55 }
 0x132   : > { %4053 = vmatmul.mubr.msk.f32.gmra.mrb[28].mxu1 %vm407_vm2, %v5967_v43  ;;  %4253 = vmatmul.mubr.msk.f32.gmra.mrb[28].mxu0 %vm407_vm2, %v5979_v10 }
 0x133   : > { %4055 = vmatprep.mubr.msk.f32.mxu1 %vm407_vm2, %v5554_v15  ;;  %4255 = vmatprep.mubr.msk.f32.mxu0 %vm407_vm2, %v2753_v24 }
 0x136   : > { %4056 = vmatmul.mubr.msk.f32.gmra.mrb[30].mxu1 %vm407_vm2, %v5568_v50  ;;  %4256 = vmatmul.mubr.msk.f32.gmra.mrb[30].mxu0 %vm407_vm2, %v2755_v12 }
 0x1ad   : > { %v3962_v40 = vpop.f32.mrb[0].mxu1 }
 0x1ae   : > { %v1477_v20 = vpop.f32.mrb[1].mxu1 }
 0x1b1   : > { %v3965_v54 = vpop.f32.mrb[2].mxu1 }
 0x1b2   : > { %v1487_v19 = vpop.f32.mrb[3].mxu1 }
 0x1b5   : > { %v3968_v13 = vpop.f32.mrb[4].mxu1 }
 0x1b6   : > { %v1497_v39 = vpop.f32.mrb[5].mxu1 }
 0x1b9   : > { %v3971_v41 = vpop.f32.mrb[6].mxu1 }
 0x1ba   : > { %v1507_v17 = vpop.f32.mrb[7].mxu1 }
 0x1bd   : > { %v3974_v61 = vpop.f32.mrb[8].mxu1 }
 0x1be   : > { %v1517_v45 = vpop.f32.mrb[9].mxu1 }
 0x1c1   : > { %v3977_v0 = vpop.f32.mrb[10].mxu1 }
 0x1c2   : > { %v1527_v16 = vpop.f32.mrb[11].mxu1 }
 0x1c5   : > { %v3980_v49 = vpop.f32.mrb[12].mxu1 }
 0x1c6   : > { %v1537_v56 = vpop.f32.mrb[13].mxu1 }
 0x1c9   : > { %v3983_v14 = vpop.f32.mrb[14].mxu1 }
 0x1ca   : > { %v5714_v36 = vpop.f32.mrb[15].mxu1 }
 0x1cd   : > { %v4212_v33 = vpop.f32.mrb[0].mxu0 }
 0x1ce   : > { %v4260_v5 = vadd.f32 %v4212_v33, %v3962_v40  ;;  %v2831_v11 = vpop.f32.mrb[1].mxu0 }
 0x1cf   : > { %v4261_v47 = vadd.f32 %v2831_v11, %v1477_v20 }
 0x1d0   : > { %v3030_v63 = vmul.f32 %v4260_v5, %v5721_v48 }
 0x1d1   : > { %v3029_v23 = vmul.f32 %v4261_v47, %v5721_v48  ;;  %v4215_v57 = vpop.f32.mrb[2].mxu0 }
 0x1d2   : > { %3062 = vst [vmem:[%s5726_s21 + $0x8] sm:$0xff] %v3030_v63  ;;  %v4262_v30 = vadd.f32 %v4215_v57, %v3965_v54  ;;  %v2841_v38 = vpop.f32.mrb[3].mxu0 }
 0x1d3   : > { %3061 = vst [vmem:[%s5726_s21] sm:$0xff] %v3029_v23  ;;  %v4263_v37 = vadd.f32 %v2841_v38, %v1487_v19 }
 0x1d4   : > { %v3032_v62 = vmul.f32 %v4262_v30, %v5721_v48 }
 0x1d5   : > { %v3031_v4 = vmul.f32 %v4263_v37, %v5721_v48  ;;  %v4218_v35 = vpop.f32.mrb[4].mxu0 }
 0x1d6   : > { %3064 = vst [vmem:[%s5726_s21 + $0x18] sm:$0xff] %v3032_v62  ;;  %v4264_v44 = vadd.f32 %v4218_v35, %v3968_v13  ;;  %v2851_v27 = vpop.f32.mrb[5].mxu0 }
 0x1d7   : > { %3063 = vst [vmem:[%s5726_s21 + $0x10] sm:$0xff] %v3031_v4  ;;  %v4265_v2 = vadd.f32 %v2851_v27, %v1497_v39 }
 0x1d8   : > { %v3034_v34 = vmul.f32 %v4264_v44, %v5721_v48 }
 0x1d9   : > { %v3033_v60 = vmul.f32 %v4265_v2, %v5721_v48  ;;  %v4221_v1 = vpop.f32.mrb[6].mxu0 }
 0x1da   : > { %3066 = vst [vmem:[%s5726_s21 + $0x28] sm:$0xff] %v3034_v34  ;;  %v4266_v15 = vadd.f32 %v4221_v1, %v3971_v41  ;;  %v2861_v18 = vpop.f32.mrb[7].mxu0 }
 0x1db   : > { %3065 = vst [vmem:[%s5726_s21 + $0x20] sm:$0xff] %v3033_v60  ;;  %v4267_v25 = vadd.f32 %v2861_v18, %v1507_v17 }
 0x1dc   : > { %v3036_v31 = vmul.f32 %v4266_v15, %v5721_v48 }
 0x1dd   : > { %v3035_v32 = vmul.f32 %v4267_v25, %v5721_v48  ;;  %v4224_v42 = vpop.f32.mrb[8].mxu0 }
 0x1de   : > { %3068 = vst [vmem:[%s5726_s21 + $0x38] sm:$0xff] %v3036_v31  ;;  %v4268_v43 = vadd.f32 %v4224_v42, %v3974_v61  ;;  %v2871_v50 = vpop.f32.mrb[9].mxu0 }
 0x1df   : > { %3067 = vst [vmem:[%s5726_s21 + $0x30] sm:$0xff] %v3035_v32  ;;  %v4269_v52 = vadd.f32 %v2871_v50, %v1517_v45 }
 0x1e0   : > { %v3038_v26 = vmul.f32 %v4268_v43, %v5721_v48 }
 0x1e1   : > { %v3037_v51 = vmul.f32 %v4269_v52, %v5721_v48  ;;  %v4227_v46 = vpop.f32.mrb[10].mxu0 }
 0x1e2   : > { %3070 = vst [vmem:[%s5726_s21 + $0x48] sm:$0xff] %v3038_v26  ;;  %v4270_v9 = vadd.f32 %v4227_v46, %v3977_v0  ;;  %v2881_v6 = vpop.f32.mrb[11].mxu0 }
 0x1e3   : > { %3069 = vst [vmem:[%s5726_s21 + $0x40] sm:$0xff] %v3037_v51  ;;  %v4271_v58 = vadd.f32 %v2881_v6, %v1527_v16 }
 0x1e4   : > { %v3040_v59 = vmul.f32 %v4270_v9, %v5721_v48 }
 0x1e5   : > { %v3039_v3 = vmul.f32 %v4271_v58, %v5721_v48  ;;  %v4230_v7 = vpop.f32.mrb[12].mxu0 }
 0x1e6   : > { %3072 = vst [vmem:[%s5726_s21 + $0x58] sm:$0xff] %v3040_v59  ;;  %v4272_v8 = vadd.f32 %v4230_v7, %v3980_v49  ;;  %v2891_v22 = vpop.f32.mrb[13].mxu0 }
 0x1e7   : > { %3071 = vst [vmem:[%s5726_s21 + $0x50] sm:$0xff] %v3039_v3  ;;  %v4273_v28 = vadd.f32 %v2891_v22, %v1537_v56 }
 0x1e8   : > { %v3042_v29 = vmul.f32 %v4272_v8, %v5721_v48 }
 0x1e9   : > { %v3041_v53 = vmul.f32 %v4273_v28, %v5721_v48  ;;  %v4233_v55 = vpop.f32.mrb[14].mxu0 }
 0x1ea   : > { %3074 = vst [vmem:[%s5726_s21 + $0x68] sm:$0xff] %v3042_v29  ;;  %v4274_v21 = vadd.f32 %v4233_v55, %v3983_v14  ;;  %v2901_v24 = vpop.f32.mrb[15].mxu0 }
 0x1eb   : > { %3073 = vst [vmem:[%s5726_s21 + $0x60] sm:$0xff] %v3041_v53  ;;  %v4275_v10 = vadd.f32 %v2901_v24, %v5714_v36 }
 0x1ec   : > { %v3044_v12 = vmul.f32 %v4274_v21, %v5721_v48 }
 0x1ed   : > { %v4036_v40 = vpop.f32.mrb[16].mxu1  ;;  %v3043_v20 = vmul.f32 %v4275_v10, %v5721_v48  ;;  %v4236_v54 = vpop.f32.mrb[16].mxu0 }
 0x1ee   : > { %v1829_v19 = vpop.f32.mrb[17].mxu1  ;;  %3076 = vst [vmem:[%s5726_s21 + $0x78] sm:$0xff] %v3044_v12  ;;  %v4276_v13 = vadd.f32 %v4236_v54, %v4036_v40  ;;  %v2911_v39 = vpop.f32.mrb[17].mxu0 }
 0x1ef   : > { %3075 = vst [vmem:[%s5726_s21 + $0x70] sm:$0xff] %v3043_v20  ;;  %v4277_v41 = vadd.f32 %v2911_v39, %v1829_v19 }
 0x1f0   : > { %v3046_v17 = vmul.f32 %v4276_v13, %v5721_v48 }
 0x1f1   : > { %v4039_v61 = vpop.f32.mrb[18].mxu1  ;;  %v3045_v45 = vmul.f32 %v4277_v41, %v5721_v48  ;;  %v4239_v0 = vpop.f32.mrb[18].mxu0 }
 0x1f2   : > { %v1839_v16 = vpop.f32.mrb[19].mxu1  ;;  %3078 = vst [vmem:[%s5726_s21 + $0x88] sm:$0xff] %v3046_v17  ;;  %v4278_v49 = vadd.f32 %v4239_v0, %v4039_v61  ;;  %v2921_v56 = vpop.f32.mrb[19].mxu0 }
 0x1f3   : > { %3077 = vst [vmem:[%s5726_s21 + $0x80] sm:$0xff] %v3045_v45  ;;  %v4279_v14 = vadd.f32 %v2921_v56, %v1839_v16 }
 0x1f4   : > { %v3048_v36 = vmul.f32 %v4278_v49, %v5721_v48 }
 0x1f5   : > { %v4042_v33 = vpop.f32.mrb[20].mxu1  ;;  %v3047_v5 = vmul.f32 %v4279_v14, %v5721_v48  ;;  %v4242_v11 = vpop.f32.mrb[20].mxu0 }
 0x1f6   : > { %v1849_v47 = vpop.f32.mrb[21].mxu1  ;;  %3080 = vst [vmem:[%s5726_s21 + $0x98] sm:$0xff] %v3048_v36  ;;  %v4280_v63 = vadd.f32 %v4242_v11, %v4042_v33  ;;  %v2931_v23 = vpop.f32.mrb[21].mxu0 }
 0x1f7   : > { %3079 = vst [vmem:[%s5726_s21 + $0x90] sm:$0xff] %v3047_v5  ;;  %v4281_v57 = vadd.f32 %v2931_v23, %v1849_v47 }
 0x1f8   : > { %v3050_v30 = vmul.f32 %v4280_v63, %v5721_v48 }
 0x1f9   : > { %v4045_v38 = vpop.f32.mrb[22].mxu1  ;;  %v3049_v37 = vmul.f32 %v4281_v57, %v5721_v48  ;;  %v4245_v62 = vpop.f32.mrb[22].mxu0 }
 0x1fa   : > { %v1859_v4 = vpop.f32.mrb[23].mxu1  ;;  %3082 = vst [vmem:[%s5726_s21 + $0xa8] sm:$0xff] %v3050_v30  ;;  %v4282_v35 = vadd.f32 %v4245_v62, %v4045_v38  ;;  %v2941_v44 = vpop.f32.mrb[23].mxu0 }
 0x1fb   : > { %3081 = vst [vmem:[%s5726_s21 + $0xa0] sm:$0xff] %v3049_v37  ;;  %v4283_v27 = vadd.f32 %v2941_v44, %v1859_v4 }
 0x1fc   : > { %v3052_v2 = vmul.f32 %v4282_v35, %v5721_v48 }
 0x1fd   : > { %v4048_v34 = vpop.f32.mrb[24].mxu1  ;;  %v3051_v60 = vmul.f32 %v4283_v27, %v5721_v48  ;;  %v4248_v1 = vpop.f32.mrb[24].mxu0 }
 0x1fe   : > { %v1869_v15 = vpop.f32.mrb[25].mxu1  ;;  %3084 = vst [vmem:[%s5726_s21 + $0xb8] sm:$0xff] %v3052_v2  ;;  %v4284_v18 = vadd.f32 %v4248_v1, %v4048_v34  ;;  %v2951_v25 = vpop.f32.mrb[25].mxu0 }
 0x1ff   : > { %3083 = vst [vmem:[%s5726_s21 + $0xb0] sm:$0xff] %v3051_v60  ;;  %v4285_v31 = vadd.f32 %v2951_v25, %v1869_v15 }
 0x200   : > { %v3054_v32 = vmul.f32 %v4284_v18, %v5721_v48 }
 0x201   : > { %v4051_v42 = vpop.f32.mrb[26].mxu1  ;;  %v3053_v43 = vmul.f32 %v4285_v31, %v5721_v48  ;;  %v4251_v50 = vpop.f32.mrb[26].mxu0 }
 0x202   : > { %v1879_v52 = vpop.f32.mrb[27].mxu1  ;;  %3086 = vst [vmem:[%s5726_s21 + $0xc8] sm:$0xff] %v3054_v32  ;;  %v4286_v26 = vadd.f32 %v4251_v50, %v4051_v42  ;;  %v2961_v51 = vpop.f32.mrb[27].mxu0 }
 0x203   : > { %3085 = vst [vmem:[%s5726_s21 + $0xc0] sm:$0xff] %v3053_v43  ;;  %v4287_v46 = vadd.f32 %v2961_v51, %v1879_v52 }
 0x204   : > { %v3056_v9 = vmul.f32 %v4286_v26, %v5721_v48 }
 0x205   : > { %v4054_v6 = vpop.f32.mrb[28].mxu1  ;;  %v3055_v58 = vmul.f32 %v4287_v46, %v5721_v48  ;;  %v4254_v59 = vpop.f32.mrb[28].mxu0 }
 0x206   : > { %v1889_v3 = vpop.f32.mrb[29].mxu1  ;;  %3088 = vst [vmem:[%s5726_s21 + $0xd8] sm:$0xff] %v3056_v9  ;;  %v4288_v7 = vadd.f32 %v4254_v59, %v4054_v6  ;;  %v2971_v8 = vpop.f32.mrb[29].mxu0 }
 0x207   : > { %3087 = vst [vmem:[%s5726_s21 + $0xd0] sm:$0xff] %v3055_v58  ;;  %v4289_v22 = vadd.f32 %v2971_v8, %v1889_v3 }
 0x208   : > { %v3058_v28 = vmul.f32 %v4288_v7, %v5721_v48 }
 0x209   : > { %v4057_v29 = vpop.f32.mrb[30].mxu1  ;;  %v3057_v53 = vmul.f32 %v4289_v22, %v5721_v48  ;;  %v4257_v55 = vpop.f32.mrb[30].mxu0 }
 0x20a   : > { %v1899_v21 = vpop.f32.mrb[31].mxu1  ;;  %3090 = vst [vmem:[%s5726_s21 + $0xe8] sm:$0xff] %v3058_v28  ;;  %v4290_v24 = vadd.f32 %v4257_v55, %v4057_v29  ;;  %v2981_v10 = vpop.f32.mrb[31].mxu0 }
 0x20b   : > { %3089 = vst [vmem:[%s5726_s21 + $0xe0] sm:$0xff] %v3057_v53  ;;  %v4291_v12 = vadd.f32 %v2981_v10, %v1899_v21 }
 0x20c   : > { %v3060_v40 = vmul.f32 %v4290_v24, %v5721_v48 }
 0x20d   : > { %v3059_v20 = vmul.f32 %v4291_v12, %v5721_v48 }
 0x20e   : > { %3092 = vst [vmem:[%s5726_s21 + $0xf8] sm:$0xff] %v3060_v40 }
 0x20f   : > { %3091 = vst [vmem:[%s5726_s21 + $0xf0] sm:$0xff] %v3059_v20 }
 0x210 PF: > { %s13_s14 = sadd.s32 1, %s4563_s14   ;;  %s5980_s12 = smov %s4559_s13 }
 0x211   : > { %p10_p5 = scmp.ge.s32.totalorder %s13_s14, 4   ;;  %s5981_s13 = smov %s5983_s15 }
 0x213   :  { %12 = sbr.rel (!%p10_p5) target bundleno = 2 (0x2), region = 73 }

</bundles_post_ra>
